<compile_context>
chip_gen: v5e
topology: v5e:2x2
jax: 0.10.0
libtpu: 0.0.40
codegen_flags: <defaults>
</compile_context>

<pallas_src>
import functools

import jax
import jax.numpy as jnp
from jax import lax
from jax.experimental import pallas as pl
from jax.experimental.pallas import tpu as pltpu


def _round_up(x, m):
    return (x + m - 1) // m * m


def attention_kernel(x_ref, wqkv_ref, wo_ref, b_ref, o_ref, outh_ref,
                     *, heads, dim_head, scale, n_valid, n_pad, bb):
    inner = heads * dim_head
    dim_pad = x_ref.shape[2]

    # Flatten the batch block so the projection matmul fills Bb*N_p MXU rows.
    x = x_ref[...].reshape(bb * n_pad, dim_pad)              # bf16 (wrapper cast)

    # Fused QKV projection: one lane-dense matmul (bf16 in, f32 accumulate).
    qkv = jnp.dot(x, wqkv_ref[...],
                  preferred_element_type=jnp.float32)        # (Bb*N_p, qkv_pad)

    # Key-padding mask, hoisted out of the head loop (only when N was padded).
    if n_valid < n_pad:
        col = lax.broadcasted_iota(jnp.int32, (1, n_pad), 1)
        key_mask = col < n_valid                             # (1, N_p)
    else:
        key_mask = None

    # Attention per (batch-in-block, head).  Static Python loops: all slice
    # offsets are compile-time constants; per-iteration temporaries die at the
    # scratch write, so nothing but `qkv` stays live across iterations.
    for bi in range(bb):
        r0 = bi * n_pad
        for h in range(heads):
            c0 = h * dim_head
            q = qkv[r0:r0 + n_pad, c0:c0 + dim_head]                       # (N_p, d)
            k = qkv[r0:r0 + n_pad, inner + c0:inner + c0 + dim_head]
            v = qkv[r0:r0 + n_pad, 2 * inner + c0:2 * inner + c0 + dim_head]

            # Fold the softmax scale into q: N*d multiplies instead of N*N.
            q = (q * scale).astype(jnp.bfloat16)
            k = k.astype(jnp.bfloat16)
            v = v.astype(jnp.bfloat16)

            # dots[i, j] = sum_d q[i, d] * k[j, d]  (bf16 in, f32 accumulate)
            dots = lax.dot_general(q, k, (((1,), (1,)), ((), ())),
                                   preferred_element_type=jnp.float32)     # (N_p, N_p)
            if key_mask is not None:
                dots = jnp.where(key_mask, dots, jnp.float32(-1e30))

            # Numerically stable softmax, kept in f32 on the VPU/EUP.
            dots = dots - jnp.max(dots, axis=-1, keepdims=True)
            e = jnp.exp(dots)
            p = e * pl.reciprocal(jnp.sum(e, axis=-1, keepdims=True), approx=True)

            out_h = jnp.dot(p.astype(jnp.bfloat16), v,
                            preferred_element_type=jnp.float32)            # (N_p, d)

            # Stage this head's context at its lane offset; consumed by one
            # fused out-projection after the loops (no per-head K=16 matmul).
            outh_ref[r0:r0 + n_pad, c0:c0 + dim_head] = out_h.astype(jnp.bfloat16)

    # Fused output projection over all heads and all batch rows at once,
    # plus bias; Dropout(p=0.0) is identity.
    y = jnp.dot(outh_ref[...], wo_ref[...],
                preferred_element_type=jnp.float32) + b_ref[...]           # (Bb*N_p, dim_p)
    o_ref[...] = y.reshape(bb, n_pad, dim_pad).astype(o_ref.dtype)


def prepare_attention_params(w_qkv, w_out, b_out, *, heads, dim_head):
    """Hoisted weight preprocessing: pad + cast once, reuse across calls."""
    dim = w_qkv.shape[0]
    inner = heads * dim_head
    assert w_qkv.shape == (dim, 3 * inner)
    assert w_out.shape == (inner, dim)

    dim_pad = _round_up(dim, 128)
    qkv_pad = _round_up(3 * inner, 128)   # 192 -> 256 here (fills v6e/v7x MXU width)

    # Column order of w_qkv is q|k|v, each (heads, dim_head) minor -- matches
    # torch's .chunk(3) followed by 'b n (h d) -> b h n d'.  Zero row/col
    # padding contributes nothing.
    wqkv_p = jnp.pad(w_qkv, ((0, dim_pad - dim), (0, qkv_pad - 3 * inner))
                     ).astype(jnp.bfloat16)                      # (dim_p, qkv_p)
    wo_p = jnp.pad(w_out, ((0, 0), (0, dim_pad - dim))
                   ).astype(jnp.bfloat16)                        # (inner, dim_p)
    bo_p = jnp.pad(b_out.reshape(1, dim), ((0, 0), (0, dim_pad - dim))
                   ).astype(jnp.float32)                         # (1, dim_p)
    return wqkv_p, wo_p, bo_p


def _pick_batch_block(B):
    # Largest divisor of B that keeps >= 2 grid steps (so both v7x TCs get
    # work); blocks here are tiny vs. VMEM on every generation.
    best = 1
    for d in range(1, B + 1):
        if B % d == 0 and (B // d) >= 2:
            best = d
    return best


def attention_pallas(x, params, *, heads, dim_head, batch_block=None):
    B, N, dim = x.shape
    inner = heads * dim_head
    wqkv_p, wo_p, bo_p = params
    dim_pad = wqkv_p.shape[0]
    qkv_pad = wqkv_p.shape[1]
    assert wo_p.shape == (inner, dim_pad)
    scale = float(dim_head) ** -0.5

    # bf16 MXU operands: pad tokens to a multiple of 16 (bf16 sublane tile),
    # embedding dim to a multiple of 128 (lane-dense, unmasked stores).
    n_pad = _round_up(N, 16)

    bb = batch_block if batch_block is not None else _pick_batch_block(B)
    assert B % bb == 0, "batch must be divisible by the batch block"

    # Only the activations are padded/cast per call (weights were prepared once).
    xp = jnp.pad(x, ((0, 0), (0, n_pad - N), (0, dim_pad - dim))
                 ).astype(jnp.bfloat16)

    kernel = functools.partial(attention_kernel, heads=heads, dim_head=dim_head,
                               scale=scale, n_valid=N, n_pad=n_pad, bb=bb)

    out = pl.pallas_call(
        kernel,
        out_shape=jax.ShapeDtypeStruct((B, n_pad, dim_pad), x.dtype),
        grid=(B // bb,),
        in_specs=[
            pl.BlockSpec((bb, n_pad, dim_pad), lambda b: (b, 0, 0)),
            pl.BlockSpec((dim_pad, qkv_pad), lambda b: (0, 0)),
            pl.BlockSpec((inner, dim_pad), lambda b: (0, 0)),
            pl.BlockSpec((1, dim_pad), lambda b: (0, 0)),
        ],
        out_specs=pl.BlockSpec((bb, n_pad, dim_pad), lambda b: (b, 0, 0)),
        scratch_shapes=[pltpu.VMEM((bb * n_pad, inner), jnp.bfloat16)],
        compiler_params=pltpu.CompilerParams(
            dimension_semantics=("parallel",),
            vmem_limit_bytes=32 * 1024 * 1024),
    )(xp, wqkv_p, wo_p, bo_p)

    return out[:, :N, :dim]


def attention_ref(x, w_qkv, w_out, b_out, *, heads, dim_head):
    """Pure-JAX reference mirroring the PyTorch Attention module (f32)."""
    B, N, dim = x.shape
    inner = heads * dim_head
    qkv = x @ w_qkv
    q, k, v = jnp.split(qkv, 3, axis=-1)

    def to_heads(t):  # 'b n (h d) -> b h n d'
        return t.reshape(B, N, heads, dim_head).transpose(0, 2, 1, 3)

    q, k, v = map(to_heads, (q, k, v))
    dots = jnp.einsum('bhid,bhjd->bhij', q, k) * (float(dim_head) ** -0.5)
    attn = jax.nn.softmax(dots, axis=-1)
    out = jnp.einsum('bhij,bhjd->bhid', attn, v)
    out = out.transpose(0, 2, 1, 3).reshape(B, N, inner)
    return out @ w_out + b_out


if __name__ == "__main__":
    # Small shapes consistent with the module: dim=32, heads=4, dim_head=16.
    B, N, dim = 4, 8, 32
    heads, dim_head = 4, 16
    inner = heads * dim_head

    key = jax.random.PRNGKey(0)
    kx, kq, ko, kb = jax.random.split(key, 4)

    x = jax.random.normal(kx, (B, N, dim), dtype=jnp.float32)
    # Deterministic synthetic parameters (stand-in for nn.Linear weights,
    # already transposed to "math-ready" x @ W layout).
    w_qkv = jax.random.normal(kq, (dim, 3 * inner), dtype=jnp.float32) * 0.05
    w_out = jax.random.normal(ko, (inner, dim), dtype=jnp.float32) * 0.05
    b_out = jax.random.normal(kb, (1, dim), dtype=jnp.float32) * 0.05

    # Weight prep is hoisted out of the forward path.
    params = prepare_attention_params(w_qkv, w_out, b_out,
                                      heads=heads, dim_head=dim_head)

    y = attention_pallas(x, params, heads=heads, dim_head=dim_head)
    y = jax.block_until_ready(y)

    y_ref = attention_ref(x, w_qkv, w_out, b_out, heads=heads, dim_head=dim_head)
    assert y.shape == (B, N, dim)
    # bf16 MXU operands + approx reciprocal: validate against a looser tolerance
    # than pure-f32 (accumulation is still f32).
    assert jnp.allclose(y, y_ref, atol=2e-2, rtol=2e-2), "mismatch vs reference"

    print("KERNEL_OK")
</pallas_src>

<mosaic_0001>
module attributes {stable_mosaic.version = 11 : i64} {
  func.func @attention_kernel(%arg0: i32, %arg1: memref<2x16x128xbf16, #tpu.memory_space<vmem>>, %arg2: memref<128x256xbf16, #tpu.memory_space<vmem>>, %arg3: memref<64x128xbf16, #tpu.memory_space<vmem>>, %arg4: memref<1x128xf32, #tpu.memory_space<vmem>>, %arg5: memref<2x16x128xf32, #tpu.memory_space<vmem>>, %arg6: memref<32x64xbf16, #tpu.memory_space<vmem>>) attributes {dimension_semantics = [#tpu.dimension_semantics<parallel>], iteration_bounds = array<i64: 2>, scalar_prefetch = 0 : i64, scratch_operands = 1 : i64, tpu.core_type = #tpu.core_type<tc>, window_params = [{transform_indices = @transform_0, window_bounds = array<i64: 2, 16, 128>}, {pipeline_mode = #tpu.pipeline_mode<synchronous>, transform_indices = @transform_1, window_bounds = array<i64: 128, 256>}, {pipeline_mode = #tpu.pipeline_mode<synchronous>, transform_indices = @transform_2, window_bounds = array<i64: 64, 128>}, {pipeline_mode = #tpu.pipeline_mode<synchronous>, transform_indices = @transform_3, window_bounds = array<i64: 1, 128>}, {transform_indices = @transform_4, window_bounds = array<i64: 2, 16, 128>}]} {
    %c0 = arith.constant 0 : index
    %c0_0 = arith.constant 0 : index
    %c0_1 = arith.constant 0 : index
    %0 = vector.load %arg1[%c0, %c0_0, %c0_1] : memref<2x16x128xbf16, #tpu.memory_space<vmem>>, vector<2x16x128xbf16>
    %1 = vector.shape_cast %0 : vector<2x16x128xbf16> to vector<32x128xbf16>
    %c0_2 = arith.constant 0 : index
    %c0_3 = arith.constant 0 : index
    %2 = vector.load %arg2[%c0_2, %c0_3] : memref<128x256xbf16, #tpu.memory_space<vmem>>, vector<128x256xbf16>
    %cst = arith.constant dense<0.000000e+00> : vector<32x256xf32>
    %3 = tpu.matmul %1, %2, %cst {dimension_numbers = #tpu.dot_dimension_numbers<[1], [0], [0], [1], [0, 0, 1, 1], [], []>} : vector<32x128xbf16>, vector<128x256xbf16>, vector<32x256xf32> -> vector<32x256xf32>
    %4 = tpu.iota {dimensions = array<i32: 1>} : vector<1x16xi32>
    %c8_i32 = arith.constant 8 : i32
    %5 = vector.broadcast %c8_i32 : i32 to vector<1x16xi32>
    %6 = arith.cmpi slt, %4, %5 : vector<1x16xi32>
    %7 = vector.extract_strided_slice %3 {offsets = [0, 0], sizes = [16, 16], strides = [1, 1]} : vector<32x256xf32> to vector<16x16xf32>
    %8 = vector.extract_strided_slice %3 {offsets = [0, 64], sizes = [16, 16], strides = [1, 1]} : vector<32x256xf32> to vector<16x16xf32>
    %9 = vector.extract_strided_slice %3 {offsets = [0, 128], sizes = [16, 16], strides = [1, 1]} : vector<32x256xf32> to vector<16x16xf32>
    %cst_4 = arith.constant 2.500000e-01 : f32
    %10 = vector.broadcast %cst_4 : f32 to vector<16x16xf32>
    %11 = arith.mulf %7, %10 : vector<16x16xf32>
    %12 = arith.truncf %11 : vector<16x16xf32> to vector<16x16xbf16>
    %13 = arith.truncf %8 : vector<16x16xf32> to vector<16x16xbf16>
    %14 = arith.truncf %9 : vector<16x16xf32> to vector<16x16xbf16>
    %cst_5 = arith.constant dense<0.000000e+00> : vector<16x16xf32>
    %15 = tpu.matmul %12, %13, %cst_5 {dimension_numbers = #tpu.dot_dimension_numbers<[1], [1], [0], [0], [0, 0, 1, 0], [], []>} : vector<16x16xbf16>, vector<16x16xbf16>, vector<16x16xf32> -> vector<16x16xf32>
    %cst_6 = arith.constant -1.000000e+30 : f32
    %16 = vector.shape_cast %6 : vector<1x16xi1> to vector<1x16xi1>
    %17 = vector.broadcast %16 : vector<1x16xi1> to vector<16x16xi1>
    %18 = vector.broadcast %cst_6 : f32 to vector<16x16xf32>
    %19 = arith.select %17, %15, %18 : vector<16x16xi1>, vector<16x16xf32>
    %cst_7 = arith.constant dense<0xFF800000> : vector<16xf32>
    %20 = vector.multi_reduction <maximumf>, %19, %cst_7 [1] : vector<16x16xf32> to vector<16xf32>
    %21 = vector.shape_cast %20 : vector<16xf32> to vector<16x1xf32>
    %22 = vector.broadcast %21 : vector<16x1xf32> to vector<16x16xf32>
    %23 = arith.subf %19, %22 : vector<16x16xf32>
    %24 = math.exp %23 : vector<16x16xf32>
    %cst_8 = arith.constant dense<0.000000e+00> : vector<16xf32>
    %25 = vector.multi_reduction <add>, %24, %cst_8 [1] : vector<16x16xf32> to vector<16xf32>
    %26 = vector.shape_cast %25 : vector<16xf32> to vector<16x1xf32>
    %27 = tpu.reciprocal %26 {approx = true} : vector<16x1xf32> -> vector<16x1xf32>
    %28 = vector.broadcast %27 : vector<16x1xf32> to vector<16x16xf32>
    %29 = arith.mulf %24, %28 : vector<16x16xf32>
    %30 = arith.truncf %29 : vector<16x16xf32> to vector<16x16xbf16>
    %cst_9 = arith.constant dense<0.000000e+00> : vector<16x16xf32>
    %31 = tpu.matmul %30, %14, %cst_9 {dimension_numbers = #tpu.dot_dimension_numbers<[1], [0], [0], [1], [0, 0, 1, 1], [], []>} : vector<16x16xbf16>, vector<16x16xbf16>, vector<16x16xf32> -> vector<16x16xf32>
    %32 = arith.truncf %31 : vector<16x16xf32> to vector<16x16xbf16>
    %c0_10 = arith.constant 0 : index
    %c0_11 = arith.constant 0 : index
    %33 = vector.load %arg6[%c0_10, %c0_11] : memref<32x64xbf16, #tpu.memory_space<vmem>>, vector<16x16xbf16>
    tpu.vector_store %arg6[%c0_10, %c0_11], %32 {strides = array<i32>} : memref<32x64xbf16, #tpu.memory_space<vmem>>, vector<16x16xbf16>,
    %34 = vector.extract_strided_slice %3 {offsets = [0, 16], sizes = [16, 16], strides = [1, 1]} : vector<32x256xf32> to vector<16x16xf32>
    %35 = vector.extract_strided_slice %3 {offsets = [0, 80], sizes = [16, 16], strides = [1, 1]} : vector<32x256xf32> to vector<16x16xf32>
    %36 = vector.extract_strided_slice %3 {offsets = [0, 144], sizes = [16, 16], strides = [1, 1]} : vector<32x256xf32> to vector<16x16xf32>
    %cst_12 = arith.constant 2.500000e-01 : f32
    %37 = vector.broadcast %cst_12 : f32 to vector<16x16xf32>
    %38 = arith.mulf %34, %37 : vector<16x16xf32>
    %39 = arith.truncf %38 : vector<16x16xf32> to vector<16x16xbf16>
    %40 = arith.truncf %35 : vector<16x16xf32> to vector<16x16xbf16>
    %41 = arith.truncf %36 : vector<16x16xf32> to vector<16x16xbf16>
    %cst_13 = arith.constant dense<0.000000e+00> : vector<16x16xf32>
    %42 = tpu.matmul %39, %40, %cst_13 {dimension_numbers = #tpu.dot_dimension_numbers<[1], [1], [0], [0], [0, 0, 1, 0], [], []>} : vector<16x16xbf16>, vector<16x16xbf16>, vector<16x16xf32> -> vector<16x16xf32>
    %cst_14 = arith.constant -1.000000e+30 : f32
    %43 = vector.shape_cast %6 : vector<1x16xi1> to vector<1x16xi1>
    %44 = vector.broadcast %43 : vector<1x16xi1> to vector<16x16xi1>
    %45 = vector.broadcast %cst_14 : f32 to vector<16x16xf32>
    %46 = arith.select %44, %42, %45 : vector<16x16xi1>, vector<16x16xf32>
    %cst_15 = arith.constant dense<0xFF800000> : vector<16xf32>
    %47 = vector.multi_reduction <maximumf>, %46, %cst_15 [1] : vector<16x16xf32> to vector<16xf32>
    %48 = vector.shape_cast %47 : vector<16xf32> to vector<16x1xf32>
    %49 = vector.broadcast %48 : vector<16x1xf32> to vector<16x16xf32>
    %50 = arith.subf %46, %49 : vector<16x16xf32>
    %51 = math.exp %50 : vector<16x16xf32>
    %cst_16 = arith.constant dense<0.000000e+00> : vector<16xf32>
    %52 = vector.multi_reduction <add>, %51, %cst_16 [1] : vector<16x16xf32> to vector<16xf32>
    %53 = vector.shape_cast %52 : vector<16xf32> to vector<16x1xf32>
    %54 = tpu.reciprocal %53 {approx = true} : vector<16x1xf32> -> vector<16x1xf32>
    %55 = vector.broadcast %54 : vector<16x1xf32> to vector<16x16xf32>
    %56 = arith.mulf %51, %55 : vector<16x16xf32>
    %57 = arith.truncf %56 : vector<16x16xf32> to vector<16x16xbf16>
    %cst_17 = arith.constant dense<0.000000e+00> : vector<16x16xf32>
    %58 = tpu.matmul %57, %41, %cst_17 {dimension_numbers = #tpu.dot_dimension_numbers<[1], [0], [0], [1], [0, 0, 1, 1], [], []>} : vector<16x16xbf16>, vector<16x16xbf16>, vector<16x16xf32> -> vector<16x16xf32>
    %59 = arith.truncf %58 : vector<16x16xf32> to vector<16x16xbf16>
    %c0_18 = arith.constant 0 : index
    %c16 = arith.constant 16 : index
    %60 = vector.load %arg6[%c0_18, %c16] : memref<32x64xbf16, #tpu.memory_space<vmem>>, vector<16x16xbf16>
    tpu.vector_store %arg6[%c0_18, %c16], %59 {strides = array<i32>} : memref<32x64xbf16, #tpu.memory_space<vmem>>, vector<16x16xbf16>,
    %61 = vector.extract_strided_slice %3 {offsets = [0, 32], sizes = [16, 16], strides = [1, 1]} : vector<32x256xf32> to vector<16x16xf32>
    %62 = vector.extract_strided_slice %3 {offsets = [0, 96], sizes = [16, 16], strides = [1, 1]} : vector<32x256xf32> to vector<16x16xf32>
    %63 = vector.extract_strided_slice %3 {offsets = [0, 160], sizes = [16, 16], strides = [1, 1]} : vector<32x256xf32> to vector<16x16xf32>
    %cst_19 = arith.constant 2.500000e-01 : f32
    %64 = vector.broadcast %cst_19 : f32 to vector<16x16xf32>
    %65 = arith.mulf %61, %64 : vector<16x16xf32>
    %66 = arith.truncf %65 : vector<16x16xf32> to vector<16x16xbf16>
    %67 = arith.truncf %62 : vector<16x16xf32> to vector<16x16xbf16>
    %68 = arith.truncf %63 : vector<16x16xf32> to vector<16x16xbf16>
    %cst_20 = arith.constant dense<0.000000e+00> : vector<16x16xf32>
    %69 = tpu.matmul %66, %67, %cst_20 {dimension_numbers = #tpu.dot_dimension_numbers<[1], [1], [0], [0], [0, 0, 1, 0], [], []>} : vector<16x16xbf16>, vector<16x16xbf16>, vector<16x16xf32> -> vector<16x16xf32>
    %cst_21 = arith.constant -1.000000e+30 : f32
    %70 = vector.shape_cast %6 : vector<1x16xi1> to vector<1x16xi1>
    %71 = vector.broadcast %70 : vector<1x16xi1> to vector<16x16xi1>
    %72 = vector.broadcast %cst_21 : f32 to vector<16x16xf32>
    %73 = arith.select %71, %69, %72 : vector<16x16xi1>, vector<16x16xf32>
    %cst_22 = arith.constant dense<0xFF800000> : vector<16xf32>
    %74 = vector.multi_reduction <maximumf>, %73, %cst_22 [1] : vector<16x16xf32> to vector<16xf32>
    %75 = vector.shape_cast %74 : vector<16xf32> to vector<16x1xf32>
    %76 = vector.broadcast %75 : vector<16x1xf32> to vector<16x16xf32>
    %77 = arith.subf %73, %76 : vector<16x16xf32>
    %78 = math.exp %77 : vector<16x16xf32>
    %cst_23 = arith.constant dense<0.000000e+00> : vector<16xf32>
    %79 = vector.multi_reduction <add>, %78, %cst_23 [1] : vector<16x16xf32> to vector<16xf32>
    %80 = vector.shape_cast %79 : vector<16xf32> to vector<16x1xf32>
    %81 = tpu.reciprocal %80 {approx = true} : vector<16x1xf32> -> vector<16x1xf32>
    %82 = vector.broadcast %81 : vector<16x1xf32> to vector<16x16xf32>
    %83 = arith.mulf %78, %82 : vector<16x16xf32>
    %84 = arith.truncf %83 : vector<16x16xf32> to vector<16x16xbf16>
    %cst_24 = arith.constant dense<0.000000e+00> : vector<16x16xf32>
    %85 = tpu.matmul %84, %68, %cst_24 {dimension_numbers = #tpu.dot_dimension_numbers<[1], [0], [0], [1], [0, 0, 1, 1], [], []>} : vector<16x16xbf16>, vector<16x16xbf16>, vector<16x16xf32> -> vector<16x16xf32>
    %86 = arith.truncf %85 : vector<16x16xf32> to vector<16x16xbf16>
    %c0_25 = arith.constant 0 : index
    %c32 = arith.constant 32 : index
    %87 = vector.load %arg6[%c0_25, %c32] : memref<32x64xbf16, #tpu.memory_space<vmem>>, vector<16x16xbf16>
    tpu.vector_store %arg6[%c0_25, %c32], %86 {strides = array<i32>} : memref<32x64xbf16, #tpu.memory_space<vmem>>, vector<16x16xbf16>,
    %88 = vector.extract_strided_slice %3 {offsets = [0, 48], sizes = [16, 16], strides = [1, 1]} : vector<32x256xf32> to vector<16x16xf32>
    %89 = vector.extract_strided_slice %3 {offsets = [0, 112], sizes = [16, 16], strides = [1, 1]} : vector<32x256xf32> to vector<16x16xf32>
    %90 = vector.extract_strided_slice %3 {offsets = [0, 176], sizes = [16, 16], strides = [1, 1]} : vector<32x256xf32> to vector<16x16xf32>
    %cst_26 = arith.constant 2.500000e-01 : f32
    %91 = vector.broadcast %cst_26 : f32 to vector<16x16xf32>
    %92 = arith.mulf %88, %91 : vector<16x16xf32>
    %93 = arith.truncf %92 : vector<16x16xf32> to vector<16x16xbf16>
    %94 = arith.truncf %89 : vector<16x16xf32> to vector<16x16xbf16>
    %95 = arith.truncf %90 : vector<16x16xf32> to vector<16x16xbf16>
    %cst_27 = arith.constant dense<0.000000e+00> : vector<16x16xf32>
    %96 = tpu.matmul %93, %94, %cst_27 {dimension_numbers = #tpu.dot_dimension_numbers<[1], [1], [0], [0], [0, 0, 1, 0], [], []>} : vector<16x16xbf16>, vector<16x16xbf16>, vector<16x16xf32> -> vector<16x16xf32>
    %cst_28 = arith.constant -1.000000e+30 : f32
    %97 = vector.shape_cast %6 : vector<1x16xi1> to vector<1x16xi1>
    %98 = vector.broadcast %97 : vector<1x16xi1> to vector<16x16xi1>
    %99 = vector.broadcast %cst_28 : f32 to vector<16x16xf32>
    %100 = arith.select %98, %96, %99 : vector<16x16xi1>, vector<16x16xf32>
    %cst_29 = arith.constant dense<0xFF800000> : vector<16xf32>
    %101 = vector.multi_reduction <maximumf>, %100, %cst_29 [1] : vector<16x16xf32> to vector<16xf32>
    %102 = vector.shape_cast %101 : vector<16xf32> to vector<16x1xf32>
    %103 = vector.broadcast %102 : vector<16x1xf32> to vector<16x16xf32>
    %104 = arith.subf %100, %103 : vector<16x16xf32>
    %105 = math.exp %104 : vector<16x16xf32>
    %cst_30 = arith.constant dense<0.000000e+00> : vector<16xf32>
    %106 = vector.multi_reduction <add>, %105, %cst_30 [1] : vector<16x16xf32> to vector<16xf32>
    %107 = vector.shape_cast %106 : vector<16xf32> to vector<16x1xf32>
    %108 = tpu.reciprocal %107 {approx = true} : vector<16x1xf32> -> vector<16x1xf32>
    %109 = vector.broadcast %108 : vector<16x1xf32> to vector<16x16xf32>
    %110 = arith.mulf %105, %109 : vector<16x16xf32>
    %111 = arith.truncf %110 : vector<16x16xf32> to vector<16x16xbf16>
    %cst_31 = arith.constant dense<0.000000e+00> : vector<16x16xf32>
    %112 = tpu.matmul %111, %95, %cst_31 {dimension_numbers = #tpu.dot_dimension_numbers<[1], [0], [0], [1], [0, 0, 1, 1], [], []>} : vector<16x16xbf16>, vector<16x16xbf16>, vector<16x16xf32> -> vector<16x16xf32>
    %113 = arith.truncf %112 : vector<16x16xf32> to vector<16x16xbf16>
    %c0_32 = arith.constant 0 : index
    %c48 = arith.constant 48 : index
    %114 = vector.load %arg6[%c0_32, %c48] : memref<32x64xbf16, #tpu.memory_space<vmem>>, vector<16x16xbf16>
    tpu.vector_store %arg6[%c0_32, %c48], %113 {strides = array<i32>} : memref<32x64xbf16, #tpu.memory_space<vmem>>, vector<16x16xbf16>,
    %115 = vector.extract_strided_slice %3 {offsets = [16, 0], sizes = [16, 16], strides = [1, 1]} : vector<32x256xf32> to vector<16x16xf32>
    %116 = vector.extract_strided_slice %3 {offsets = [16, 64], sizes = [16, 16], strides = [1, 1]} : vector<32x256xf32> to vector<16x16xf32>
    %117 = vector.extract_strided_slice %3 {offsets = [16, 128], sizes = [16, 16], strides = [1, 1]} : vector<32x256xf32> to vector<16x16xf32>
    %cst_33 = arith.constant 2.500000e-01 : f32
    %118 = vector.broadcast %cst_33 : f32 to vector<16x16xf32>
    %119 = arith.mulf %115, %118 : vector<16x16xf32>
    %120 = arith.truncf %119 : vector<16x16xf32> to vector<16x16xbf16>
    %121 = arith.truncf %116 : vector<16x16xf32> to vector<16x16xbf16>
    %122 = arith.truncf %117 : vector<16x16xf32> to vector<16x16xbf16>
    %cst_34 = arith.constant dense<0.000000e+00> : vector<16x16xf32>
    %123 = tpu.matmul %120, %121, %cst_34 {dimension_numbers = #tpu.dot_dimension_numbers<[1], [1], [0], [0], [0, 0, 1, 0], [], []>} : vector<16x16xbf16>, vector<16x16xbf16>, vector<16x16xf32> -> vector<16x16xf32>
    %cst_35 = arith.constant -1.000000e+30 : f32
    %124 = vector.shape_cast %6 : vector<1x16xi1> to vector<1x16xi1>
    %125 = vector.broadcast %124 : vector<1x16xi1> to vector<16x16xi1>
    %126 = vector.broadcast %cst_35 : f32 to vector<16x16xf32>
    %127 = arith.select %125, %123, %126 : vector<16x16xi1>, vector<16x16xf32>
    %cst_36 = arith.constant dense<0xFF800000> : vector<16xf32>
    %128 = vector.multi_reduction <maximumf>, %127, %cst_36 [1] : vector<16x16xf32> to vector<16xf32>
    %129 = vector.shape_cast %128 : vector<16xf32> to vector<16x1xf32>
    %130 = vector.broadcast %129 : vector<16x1xf32> to vector<16x16xf32>
    %131 = arith.subf %127, %130 : vector<16x16xf32>
    %132 = math.exp %131 : vector<16x16xf32>
    %cst_37 = arith.constant dense<0.000000e+00> : vector<16xf32>
    %133 = vector.multi_reduction <add>, %132, %cst_37 [1] : vector<16x16xf32> to vector<16xf32>
    %134 = vector.shape_cast %133 : vector<16xf32> to vector<16x1xf32>
    %135 = tpu.reciprocal %134 {approx = true} : vector<16x1xf32> -> vector<16x1xf32>
    %136 = vector.broadcast %135 : vector<16x1xf32> to vector<16x16xf32>
    %137 = arith.mulf %132, %136 : vector<16x16xf32>
    %138 = arith.truncf %137 : vector<16x16xf32> to vector<16x16xbf16>
    %cst_38 = arith.constant dense<0.000000e+00> : vector<16x16xf32>
    %139 = tpu.matmul %138, %122, %cst_38 {dimension_numbers = #tpu.dot_dimension_numbers<[1], [0], [0], [1], [0, 0, 1, 1], [], []>} : vector<16x16xbf16>, vector<16x16xbf16>, vector<16x16xf32> -> vector<16x16xf32>
    %140 = arith.truncf %139 : vector<16x16xf32> to vector<16x16xbf16>
    %c16_39 = arith.constant 16 : index
    %c0_40 = arith.constant 0 : index
    %141 = vector.load %arg6[%c16_39, %c0_40] : memref<32x64xbf16, #tpu.memory_space<vmem>>, vector<16x16xbf16>
    tpu.vector_store %arg6[%c16_39, %c0_40], %140 {strides = array<i32>} : memref<32x64xbf16, #tpu.memory_space<vmem>>, vector<16x16xbf16>,
    %142 = vector.extract_strided_slice %3 {offsets = [16, 16], sizes = [16, 16], strides = [1, 1]} : vector<32x256xf32> to vector<16x16xf32>
    %143 = vector.extract_strided_slice %3 {offsets = [16, 80], sizes = [16, 16], strides = [1, 1]} : vector<32x256xf32> to vector<16x16xf32>
    %144 = vector.extract_strided_slice %3 {offsets = [16, 144], sizes = [16, 16], strides = [1, 1]} : vector<32x256xf32> to vector<16x16xf32>
    %cst_41 = arith.constant 2.500000e-01 : f32
    %145 = vector.broadcast %cst_41 : f32 to vector<16x16xf32>
    %146 = arith.mulf %142, %145 : vector<16x16xf32>
    %147 = arith.truncf %146 : vector<16x16xf32> to vector<16x16xbf16>
    %148 = arith.truncf %143 : vector<16x16xf32> to vector<16x16xbf16>
    %149 = arith.truncf %144 : vector<16x16xf32> to vector<16x16xbf16>
    %cst_42 = arith.constant dense<0.000000e+00> : vector<16x16xf32>
    %150 = tpu.matmul %147, %148, %cst_42 {dimension_numbers = #tpu.dot_dimension_numbers<[1], [1], [0], [0], [0, 0, 1, 0], [], []>} : vector<16x16xbf16>, vector<16x16xbf16>, vector<16x16xf32> -> vector<16x16xf32>
    %cst_43 = arith.constant -1.000000e+30 : f32
    %151 = vector.shape_cast %6 : vector<1x16xi1> to vector<1x16xi1>
    %152 = vector.broadcast %151 : vector<1x16xi1> to vector<16x16xi1>
    %153 = vector.broadcast %cst_43 : f32 to vector<16x16xf32>
    %154 = arith.select %152, %150, %153 : vector<16x16xi1>, vector<16x16xf32>
    %cst_44 = arith.constant dense<0xFF800000> : vector<16xf32>
    %155 = vector.multi_reduction <maximumf>, %154, %cst_44 [1] : vector<16x16xf32> to vector<16xf32>
    %156 = vector.shape_cast %155 : vector<16xf32> to vector<16x1xf32>
    %157 = vector.broadcast %156 : vector<16x1xf32> to vector<16x16xf32>
    %158 = arith.subf %154, %157 : vector<16x16xf32>
    %159 = math.exp %158 : vector<16x16xf32>
    %cst_45 = arith.constant dense<0.000000e+00> : vector<16xf32>
    %160 = vector.multi_reduction <add>, %159, %cst_45 [1] : vector<16x16xf32> to vector<16xf32>
    %161 = vector.shape_cast %160 : vector<16xf32> to vector<16x1xf32>
    %162 = tpu.reciprocal %161 {approx = true} : vector<16x1xf32> -> vector<16x1xf32>
    %163 = vector.broadcast %162 : vector<16x1xf32> to vector<16x16xf32>
    %164 = arith.mulf %159, %163 : vector<16x16xf32>
    %165 = arith.truncf %164 : vector<16x16xf32> to vector<16x16xbf16>
    %cst_46 = arith.constant dense<0.000000e+00> : vector<16x16xf32>
    %166 = tpu.matmul %165, %149, %cst_46 {dimension_numbers = #tpu.dot_dimension_numbers<[1], [0], [0], [1], [0, 0, 1, 1], [], []>} : vector<16x16xbf16>, vector<16x16xbf16>, vector<16x16xf32> -> vector<16x16xf32>
    %167 = arith.truncf %166 : vector<16x16xf32> to vector<16x16xbf16>
    %c16_47 = arith.constant 16 : index
    %c16_48 = arith.constant 16 : index
    %168 = vector.load %arg6[%c16_47, %c16_48] : memref<32x64xbf16, #tpu.memory_space<vmem>>, vector<16x16xbf16>
    tpu.vector_store %arg6[%c16_47, %c16_48], %167 {strides = array<i32>} : memref<32x64xbf16, #tpu.memory_space<vmem>>, vector<16x16xbf16>,
    %169 = vector.extract_strided_slice %3 {offsets = [16, 32], sizes = [16, 16], strides = [1, 1]} : vector<32x256xf32> to vector<16x16xf32>
    %170 = vector.extract_strided_slice %3 {offsets = [16, 96], sizes = [16, 16], strides = [1, 1]} : vector<32x256xf32> to vector<16x16xf32>
    %171 = vector.extract_strided_slice %3 {offsets = [16, 160], sizes = [16, 16], strides = [1, 1]} : vector<32x256xf32> to vector<16x16xf32>
    %cst_49 = arith.constant 2.500000e-01 : f32
    %172 = vector.broadcast %cst_49 : f32 to vector<16x16xf32>
    %173 = arith.mulf %169, %172 : vector<16x16xf32>
    %174 = arith.truncf %173 : vector<16x16xf32> to vector<16x16xbf16>
    %175 = arith.truncf %170 : vector<16x16xf32> to vector<16x16xbf16>
    %176 = arith.truncf %171 : vector<16x16xf32> to vector<16x16xbf16>
    %cst_50 = arith.constant dense<0.000000e+00> : vector<16x16xf32>
    %177 = tpu.matmul %174, %175, %cst_50 {dimension_numbers = #tpu.dot_dimension_numbers<[1], [1], [0], [0], [0, 0, 1, 0], [], []>} : vector<16x16xbf16>, vector<16x16xbf16>, vector<16x16xf32> -> vector<16x16xf32>
    %cst_51 = arith.constant -1.000000e+30 : f32
    %178 = vector.shape_cast %6 : vector<1x16xi1> to vector<1x16xi1>
    %179 = vector.broadcast %178 : vector<1x16xi1> to vector<16x16xi1>
    %180 = vector.broadcast %cst_51 : f32 to vector<16x16xf32>
    %181 = arith.select %179, %177, %180 : vector<16x16xi1>, vector<16x16xf32>
    %cst_52 = arith.constant dense<0xFF800000> : vector<16xf32>
    %182 = vector.multi_reduction <maximumf>, %181, %cst_52 [1] : vector<16x16xf32> to vector<16xf32>
    %183 = vector.shape_cast %182 : vector<16xf32> to vector<16x1xf32>
    %184 = vector.broadcast %183 : vector<16x1xf32> to vector<16x16xf32>
    %185 = arith.subf %181, %184 : vector<16x16xf32>
    %186 = math.exp %185 : vector<16x16xf32>
    %cst_53 = arith.constant dense<0.000000e+00> : vector<16xf32>
    %187 = vector.multi_reduction <add>, %186, %cst_53 [1] : vector<16x16xf32> to vector<16xf32>
    %188 = vector.shape_cast %187 : vector<16xf32> to vector<16x1xf32>
    %189 = tpu.reciprocal %188 {approx = true} : vector<16x1xf32> -> vector<16x1xf32>
    %190 = vector.broadcast %189 : vector<16x1xf32> to vector<16x16xf32>
    %191 = arith.mulf %186, %190 : vector<16x16xf32>
    %192 = arith.truncf %191 : vector<16x16xf32> to vector<16x16xbf16>
    %cst_54 = arith.constant dense<0.000000e+00> : vector<16x16xf32>
    %193 = tpu.matmul %192, %176, %cst_54 {dimension_numbers = #tpu.dot_dimension_numbers<[1], [0], [0], [1], [0, 0, 1, 1], [], []>} : vector<16x16xbf16>, vector<16x16xbf16>, vector<16x16xf32> -> vector<16x16xf32>
    %194 = arith.truncf %193 : vector<16x16xf32> to vector<16x16xbf16>
    %c16_55 = arith.constant 16 : index
    %c32_56 = arith.constant 32 : index
    %195 = vector.load %arg6[%c16_55, %c32_56] : memref<32x64xbf16, #tpu.memory_space<vmem>>, vector<16x16xbf16>
    tpu.vector_store %arg6[%c16_55, %c32_56], %194 {strides = array<i32>} : memref<32x64xbf16, #tpu.memory_space<vmem>>, vector<16x16xbf16>,
    %196 = vector.extract_strided_slice %3 {offsets = [16, 48], sizes = [16, 16], strides = [1, 1]} : vector<32x256xf32> to vector<16x16xf32>
    %197 = vector.extract_strided_slice %3 {offsets = [16, 112], sizes = [16, 16], strides = [1, 1]} : vector<32x256xf32> to vector<16x16xf32>
    %198 = vector.extract_strided_slice %3 {offsets = [16, 176], sizes = [16, 16], strides = [1, 1]} : vector<32x256xf32> to vector<16x16xf32>
    %cst_57 = arith.constant 2.500000e-01 : f32
    %199 = vector.broadcast %cst_57 : f32 to vector<16x16xf32>
    %200 = arith.mulf %196, %199 : vector<16x16xf32>
    %201 = arith.truncf %200 : vector<16x16xf32> to vector<16x16xbf16>
    %202 = arith.truncf %197 : vector<16x16xf32> to vector<16x16xbf16>
    %203 = arith.truncf %198 : vector<16x16xf32> to vector<16x16xbf16>
    %cst_58 = arith.constant dense<0.000000e+00> : vector<16x16xf32>
    %204 = tpu.matmul %201, %202, %cst_58 {dimension_numbers = #tpu.dot_dimension_numbers<[1], [1], [0], [0], [0, 0, 1, 0], [], []>} : vector<16x16xbf16>, vector<16x16xbf16>, vector<16x16xf32> -> vector<16x16xf32>
    %cst_59 = arith.constant -1.000000e+30 : f32
    %205 = vector.shape_cast %6 : vector<1x16xi1> to vector<1x16xi1>
    %206 = vector.broadcast %205 : vector<1x16xi1> to vector<16x16xi1>
    %207 = vector.broadcast %cst_59 : f32 to vector<16x16xf32>
    %208 = arith.select %206, %204, %207 : vector<16x16xi1>, vector<16x16xf32>
    %cst_60 = arith.constant dense<0xFF800000> : vector<16xf32>
    %209 = vector.multi_reduction <maximumf>, %208, %cst_60 [1] : vector<16x16xf32> to vector<16xf32>
    %210 = vector.shape_cast %209 : vector<16xf32> to vector<16x1xf32>
    %211 = vector.broadcast %210 : vector<16x1xf32> to vector<16x16xf32>
    %212 = arith.subf %208, %211 : vector<16x16xf32>
    %213 = math.exp %212 : vector<16x16xf32>
    %cst_61 = arith.constant dense<0.000000e+00> : vector<16xf32>
    %214 = vector.multi_reduction <add>, %213, %cst_61 [1] : vector<16x16xf32> to vector<16xf32>
    %215 = vector.shape_cast %214 : vector<16xf32> to vector<16x1xf32>
    %216 = tpu.reciprocal %215 {approx = true} : vector<16x1xf32> -> vector<16x1xf32>
    %217 = vector.broadcast %216 : vector<16x1xf32> to vector<16x16xf32>
    %218 = arith.mulf %213, %217 : vector<16x16xf32>
    %219 = arith.truncf %218 : vector<16x16xf32> to vector<16x16xbf16>
    %cst_62 = arith.constant dense<0.000000e+00> : vector<16x16xf32>
    %220 = tpu.matmul %219, %203, %cst_62 {dimension_numbers = #tpu.dot_dimension_numbers<[1], [0], [0], [1], [0, 0, 1, 1], [], []>} : vector<16x16xbf16>, vector<16x16xbf16>, vector<16x16xf32> -> vector<16x16xf32>
    %221 = arith.truncf %220 : vector<16x16xf32> to vector<16x16xbf16>
    %c16_63 = arith.constant 16 : index
    %c48_64 = arith.constant 48 : index
    %222 = vector.load %arg6[%c16_63, %c48_64] : memref<32x64xbf16, #tpu.memory_space<vmem>>, vector<16x16xbf16>
    tpu.vector_store %arg6[%c16_63, %c48_64], %221 {strides = array<i32>} : memref<32x64xbf16, #tpu.memory_space<vmem>>, vector<16x16xbf16>,
    %c0_65 = arith.constant 0 : index
    %c0_66 = arith.constant 0 : index
    %223 = vector.load %arg6[%c0_65, %c0_66] : memref<32x64xbf16, #tpu.memory_space<vmem>>, vector<32x64xbf16>
    %c0_67 = arith.constant 0 : index
    %c0_68 = arith.constant 0 : index
    %224 = vector.load %arg3[%c0_67, %c0_68] : memref<64x128xbf16, #tpu.memory_space<vmem>>, vector<64x128xbf16>
    %cst_69 = arith.constant dense<0.000000e+00> : vector<32x128xf32>
    %225 = tpu.matmul %223, %224, %cst_69 {dimension_numbers = #tpu.dot_dimension_numbers<[1], [0], [0], [1], [0, 0, 1, 1], [], []>} : vector<32x64xbf16>, vector<64x128xbf16>, vector<32x128xf32> -> vector<32x128xf32>
    %c0_70 = arith.constant 0 : index
    %c0_71 = arith.constant 0 : index
    %226 = vector.load %arg4[%c0_70, %c0_71] : memref<1x128xf32, #tpu.memory_space<vmem>>, vector<1x128xf32>
    %227 = vector.broadcast %226 : vector<1x128xf32> to vector<32x128xf32>
    %228 = arith.addf %225, %227 : vector<32x128xf32>
    %229 = vector.shape_cast %228 : vector<32x128xf32> to vector<2x16x128xf32>
    %c0_72 = arith.constant 0 : index
    %c0_73 = arith.constant 0 : index
    %c0_74 = arith.constant 0 : index
    %230 = vector.load %arg5[%c0_72, %c0_73, %c0_74] : memref<2x16x128xf32, #tpu.memory_space<vmem>>, vector<2x16x128xf32>
    tpu.vector_store %arg5[%c0_72, %c0_73, %c0_74], %229 {strides = array<i32>} : memref<2x16x128xf32, #tpu.memory_space<vmem>>, vector<2x16x128xf32>,
    return
  }
  func.func @transform_0(%arg0: i32) -> (i32, i32, i32) {
    %c0_i32 = arith.constant 0 : i32
    %c0_i32_0 = arith.constant 0 : i32
    %c0_i32_1 = arith.constant 0 : i32
    return %arg0, %c0_i32, %c0_i32_0 : i32, i32, i32
  }
  func.func @transform_1(%arg0: i32) -> (i32, i32) {
    %c0_i32 = arith.constant 0 : i32
    %c0_i32_0 = arith.constant 0 : i32
    %c0_i32_1 = arith.constant 0 : i32
    return %c0_i32, %c0_i32_0 : i32, i32
  }
  func.func @transform_2(%arg0: i32) -> (i32, i32) {
    %c0_i32 = arith.constant 0 : i32
    %c0_i32_0 = arith.constant 0 : i32
    %c0_i32_1 = arith.constant 0 : i32
    return %c0_i32, %c0_i32_0 : i32, i32
  }
  func.func @transform_3(%arg0: i32) -> (i32, i32) {
    %c0_i32 = arith.constant 0 : i32
    %c0_i32_0 = arith.constant 0 : i32
    %c0_i32_1 = arith.constant 0 : i32
    return %c0_i32, %c0_i32_0 : i32, i32
  }
  func.func @transform_4(%arg0: i32) -> (i32, i32, i32) {
    %c0_i32 = arith.constant 0 : i32
    %c0_i32_0 = arith.constant 0 : i32
    %c0_i32_1 = arith.constant 0 : i32
    return %arg0, %c0_i32, %c0_i32_0 : i32, i32, i32
  }
}

</mosaic_0001>

<bundles_post_ra>
// kernel: tpu_custom_call.1
= control target key start
LH: loop header
LB: loop body
LE: loop exit
PB: predicated region body
PF: predicated region fallthrough
CT: control target
= control target key end

     0   :  { %9 = vsyncpa [#allocation4], 0  ;;  %s2152_s0 = inlined_call_operand.hbm [shape: bf16[4,16,128], index: 0, kind: input, shape index: {}]   ;;  %s2153_s1 = inlined_call_operand.hbm [shape: bf16[128,256], index: 1, kind: input, shape index: {}]   ;;  %s2154_s2 = inlined_call_operand.hbm [shape: bf16[64,128], index: 2, kind: input, shape index: {}]   ;;  %s2155_s3 = inlined_call_operand.vmem [shape: f32[1,128], index: 3, kind: input, shape index: {}]   ;;  %s2156_s4 = inlined_call_operand.hbm [shape: f32[4,16,128], index: 4, kind: output, shape index: {}]  }
   0x1   :  { %11 = vsyncpa [#allocation4 + $0x1], 0 }
   0x2   :  { %12 = vsyncpa [#allocation7], 0 }
   0x3   :  { %13 = vsyncpa [#allocation5], 0 }
   0x4   :  { %15 = vsyncpa [#allocation5 + $0x1], 0  ;;  %s1751_s15 = smov 0   ;;  %s1753_s16 = smov 0  }
   0x5   :  { %s1755_s17 = smov 0   ;;  %s1757_s18 = smov 0  }
   0x6 LB: > { %s1772_s19 = sadd.s32 4294967295, %s1709_s18   ;;  %s1242_s20 = sadd.s32 4294967294, %s1709_s18   ;;  %s1709_s18 = sphi %s1757_s18, %s2166_s18   ;;  %s1705_s17 = sphi %s1755_s17, %s2165_s17   ;;  %s1701_s16 = sphi %s1753_s16, %s2164_s16   ;;  %s1697_s15 = sphi %s1751_s15, %s2163_s15  }
   0x7   : > { %p41_p0 = scmp.ne.s32.totalorder %s1701_s16, %s1697_s15  ;;  %p42_p1 = scmp.eq.s32.totalorder %s1772_s19, 0 }
   0x8   : > { %p128_p2 = scmp.eq.s32.totalorder %s1772_s19, 1  ;;  %p134_p3 = scmp.eq.s32.totalorder %s1242_s20, 1 }
   0x9   : > { %p1781_p4 = por %p42_p1, %p41_p0  ;;  %p1243_p5 = scmp.ge.s32.totalorder %s1709_s18, 1 }
   0xa   : > { %p1786_p6 = por %p134_p3, %p41_p0  ;;  %p141_p7 = scmp.lt.s32.totalorder %s1709_s18, 3 }
   0xb   : > { %s152_s25 = sshll.u32 %s2153_s1, 4  ;;  %s1711_s27 = smov [#allocation6]   ;;  %s153_s25 = int_to_ptr.hbm [resolvable:$true] %s152_s25 }
   0xc   : > { %p1794_p8 = pnand %p1243_p5, %p141_p7  ;;  %s154_s28 = sshll.u32 %s1711_s27, 4  ;;  %s155_s28 = int_to_ptr.vmem [resolvable:$true] %s154_s28 }
   0xd   : > { %s166_s5 = sshll.u32 %s2154_s2, 4  ;;  %s1712_s6 = smov 128   ;;  %s167_s5 = int_to_ptr.hbm [resolvable:$true] %s166_s5 }
   0xe   : > { %p1416_p9 = pneg %p1794_p8  ;;  %s1713_s7 = smov 8  }
   0xf   : > { %s1714_s8 = smov [#allocation8]   ;;  %s1715_s10 = smov 64  }
  0x10   : > { %p1417_p10 = pnand %p1416_p9, %p42_p1  ;;  %s168_s9 = sshll.u32 %s1714_s8, 4  ;;  %s169_s9 = int_to_ptr.vmem [resolvable:$true] %s168_s9 }
  0x11   : > { %s1716_s11 = smov 4   ;;  %s1810_s12 = sadd.s32 1, %s1709_s18  }
  0x12   : > { %1419 = dma.hbm_to_vmem [thread:$0]  (!%p1417_p10), %s153_s25, 2048, %s155_s28, [#allocation7], %s1712_s6, %s1712_s6, %s1713_s7  }
  0x13   : > { %1422 = dma.hbm_to_vmem [thread:$0]  (!%p1417_p10), %s167_s5, 512, %s169_s9, [#allocation7], %s1715_s10, %s1715_s10, %s1716_s11  }
  0x14   : > { %s25_s13 = ssub.s32 %s1709_s18, %s1810_s12  ;;  %s28_s14 = sadd.s32 1, %s1705_s17 }
  0x15   : > { %p26_p12 = scmp.eq.s32.totalorder %s25_s13, 0  ;;  %p35_p13 = scmp.ne.s32.totalorder %s1705_s17, %s1701_s16 }
  0x16   : > { %p36_p0 = scmp.eq.s32.totalorder %s1709_s18, 0  ;;  %p1433_p7 = scmp.lt.s32.totalorder %s1709_s18, 2 }
  0x17   : > { %s1819_s20 = scalar_select %p26_p12, %s1705_s17, %s28_s14  }
  0x18   : > { %p37_p3 = por %p36_p0, %p35_p13  ;;  %p1823_p5 = por %p128_p2, %p35_p13 }
  0x19   : > { %s185_s24 = sand.u32 1, %s1705_s17   ;;  %s1377_s27 = sshll.u32 %s1709_s18, 4 }
  0x1a   : > { %s1247_s25 = sshll.u32 %s185_s24, 4  ;;  %s195_s30 = scalar_lea.hbm %s2152_s0, %s1377_s27 }
  0x1b   : > { %s189_s5 = scalar_lea.vmem [#allocation3], %s1247_s25  ;;  %s196_s7 = sshll.u32 %s195_s30, 4  ;;  %s197_s7 = int_to_ptr.hbm [resolvable:$true] %s196_s7 }
  0x1c   : > { %s198_s6 = sshll.u32 %s189_s5, 4  ;;  %p1833_p9 = pnand %p1433_p7, %p37_p3  ;;  %s199_s6 = int_to_ptr.vmem [resolvable:$true] %s198_s6 }
  0x1d   : > { %s186_s9 = scalar_lea.sflag [#allocation4], %s185_s24  ;;  %s1609_s13 = sshra.s32 %s197_s7, 4  ;;  %s1610_s13 = int_to_ptr.hbm [resolvable:$true] %s1609_s13 }
  0x1e   : > { %s1611_s14 = scalar_lea.hbm %s1610_s13, 16  ;;  %p1613_p10 = pneg %p1833_p9 }
  0x1f   : > { %p1612_p2 = scmp.ne.s32.totalorder %s1610_s13, %s1611_s14  ;;  %s1616_s28 = scalar_lea.hbm %s2152_s0, 32 }
  0x20   : > { %p1617_p0 = scmp.lt.s32.totalorder %s1610_s13, %s2152_s0  ;;  %p1618_p3 = scmp.lt.s32.totalorder %s1616_s28, %s1611_s14 }
  0x21   : > { %p1614_p12 = pnand %p1613_p10, %p1612_p2 }
  0x22   : > { %p1619_p7 = por %p1618_p3, %p1617_p0 }
  0x23   : > { %p1615_p13 = pneg %p1614_p12 }
  0x25   : > { %p1620_p11 = pnand %p1619_p7, %p1615_p13 }
  0x27   : > { %1623 = shalt.err (!%p1620_p11)
}
  0x28   : > { %1426 = dma.hbm_to_vmem [thread:$0]  (!%p1833_p9), %s197_s7, 256, %s199_s6, %s186_s9, %s1715_s10, %s1715_s10, %s1716_s11  }
  0x29   : > { %210 = sbr.rel (%p1794_p8) target bundleno = 1686 (0x696), region = 36  ;;  %s1853_s24 = sand.u32 (!%p1794_p8), 1, %s1701_s16  }
  0x2a   : > { %s1252_s5 = sshll.u32 (!%p1794_p8), %s1853_s24, 4  ;;  %s213_s13 = scalar_lea.sflag (!%p1794_p8), [#allocation4], %s1853_s24 }
  0x2b   : > { %s1857_s14 = scalar_lea.vmem (!%p1794_p8), [#allocation3], %s1252_s5 }
  0x2e   : > { %1684 = dma.done.wait (%p1781_p4), %s213_s13, 256  }
  0x2f   : > { %1686 = vsyncadd (%p1781_p4), %s213_s13, 4294967040 }
  0x30   : > { %1688 = dma.done.wait (%p42_p1), [#allocation7], 2560  }
  0x31   : > { %1690 = vsyncadd (%p42_p1), [#allocation7], 4294964736  ;;  %v1322_v0 = vld [vmem:[#allocation6 + $0x70] sm:$0xf]  ;;  %v1395_v1 = vld [vmem:[#allocation6 + $0x74] sm:$0xf0]  ;;  %v405_v63 = vlaneseq }
  0x32   : > { %v1314_v2 = vld [vmem:[#allocation6 + $0x60] sm:$0xf]  ;;  %v1323_v3 = vor.u32 %v1395_v1, %v1322_v0  ;;  %v1393_v4 = vld [vmem:[#allocation6 + $0x64] sm:$0xf0]  ;;  %v1306_v6 = vld [vmem:[#allocation6 + $0x50] sm:$0xf] }
  0x33   : > { %v1315_v5 = vor.u32 %v1393_v4, %v1314_v2  ;;  %v1391_v7 = vld [vmem:[#allocation6 + $0x54] sm:$0xf0]  ;;  %v1394_v8 = vld [vmem:[#allocation6 + $0x74] sm:$0xf]  ;;  %v1324_v9 = vld [vmem:[#allocation6 + $0x78] sm:$0xf0] }
  0x34   : > { %367 = vmatpush.bf16.msra.mxu0 %v1323_v3  ;;  %v1392_v10 = vld [vmem:[#allocation6 + $0x64] sm:$0xf]  ;;  %v1316_v11 = vld [vmem:[#allocation6 + $0x68] sm:$0xf0]  ;;  %v1307_v12 = vor.u32 %v1391_v7, %v1306_v6  ;;  %v1327_v13 = vor.u32 %v1394_v8, %v1324_v9  ;;  %v1298_v14 = vld [vmem:[#allocation6 + $0x40] sm:$0xf] }
  0x35   : > { %v1389_v15 = vld [vmem:[#allocation6 + $0x44] sm:$0xf0]  ;;  %v1319_v16 = vor.u32 %v1392_v10, %v1316_v11  ;;  %v1390_v17 = vld [vmem:[#allocation6 + $0x54] sm:$0xf]  ;;  %v1308_v18 = vld [vmem:[#allocation6 + $0x58] sm:$0xf0] }
  0x36   : > { %386 = vmatpush.bf16.msra.mxu1 %v1327_v13  ;;  %v1299_v19 = vor.u32 %v1389_v15, %v1298_v14  ;;  %v1290_v20 = vld [vmem:[#allocation6 + $0x30] sm:$0xf]  ;;  %v1387_v21 = vld [vmem:[#allocation6 + $0x34] sm:$0xf0]  ;;  %v1311_v22 = vor.u32 %v1390_v17, %v1308_v18  ;;  %v1388_v23 = vld [vmem:[#allocation6 + $0x44] sm:$0xf] }
  0x37   : > { %v1300_v24 = vld [vmem:[#allocation6 + $0x48] sm:$0xf0]  ;;  %v1291_v25 = vor.u32 %v1387_v21, %v1290_v20  ;;  %v1282_v26 = vld [vmem:[#allocation6 + $0x20] sm:$0xf]  ;;  %v1385_v27 = vld [vmem:[#allocation6 + $0x24] sm:$0xf0] }
  0x38   : > { %368 = vmatpush.bf16.msra.mxu0 %v1315_v5  ;;  %v1303_v28 = vor.u32 %v1388_v23, %v1300_v24  ;;  %v1386_v29 = vld [vmem:[#allocation6 + $0x34] sm:$0xf]  ;;  %v1292_v30 = vld [vmem:[#allocation6 + $0x38] sm:$0xf0]  ;;  %v1283_v31 = vor.u32 %v1385_v27, %v1282_v26  ;;  %v1274_v32 = vld [vmem:[#allocation6 + $0x10] sm:$0xf] }
  0x39   : > { %v1383_v33 = vld [vmem:[#allocation6 + $0x14] sm:$0xf0]  ;;  %v1295_v34 = vor.u32 %v1386_v29, %v1292_v30  ;;  %v1384_v35 = vld [vmem:[#allocation6 + $0x24] sm:$0xf]  ;;  %v1284_v36 = vld [vmem:[#allocation6 + $0x28] sm:$0xf0] }
  0x3a   : > { %387 = vmatpush.bf16.msra.mxu1 %v1319_v16  ;;  %v1275_v37 = vor.u32 %v1383_v33, %v1274_v32  ;;  %v1266_v38 = vld [vmem:[#allocation6] sm:$0xf]  ;;  %v1381_v39 = vld [vmem:[#allocation6 + $0x4] sm:$0xf0]  ;;  %v1287_v40 = vor.u32 %v1384_v35, %v1284_v36  ;;  %v1382_v41 = vld [vmem:[#allocation6 + $0x14] sm:$0xf] }
  0x3b   : > { %v1276_v42 = vld [vmem:[#allocation6 + $0x18] sm:$0xf0]  ;;  %v1267_v43 = vor.u32 %v1381_v39, %v1266_v38  ;;  %v1378_v45 = vld [vmem:[%s1857_s14] sm:$0xff]  ;;  %v1268_v47 = vld [vmem:[#allocation6 + $0x8] sm:$0xf0]  ;;  %s1717_s21 = smov 48  }
  0x3c   : > { %369 = vmatpush.bf16.msra.mxu0 %v1307_v12  ;;  %v1279_v44 = vor.u32 %v1382_v41, %v1276_v42  ;;  %v1380_v46 = vld [vmem:[#allocation6 + $0x4] sm:$0xf]  ;;  %s1718_s26 = smov 64   ;;  %vm416_vm0 = vcmask 130048   ;;  %v1379_v62 = vld [vmem:[%s1857_s14 + $0x8] sm:$0xff]  ;;  %v1877_v0 = vand.u32 127, %v405_v63 }
  0x3d   : > { %v1271_v48 = vor.u32 %v1380_v46, %v1268_v47  ;;  %s1719_s10 = smov 112   ;;  %s1720_s11 = smov 96   ;;  %vm483_vm2 = vcmask 125952   ;;  %vm567_vm3 = vcmask 257152   ;;  %vm649_vm4 = vcmask 388352  }
  0x3e   : > { %388 = vmatpush.bf16.msra.mxu1 %v1311_v22  ;;  %vm407_vm1 = vcmp.lt.s32.totalorder %v1877_v0, 8  ;;  %s1721_s6 = smov 32   ;;  %s1722_s7 = smov 16   ;;  %vm731_vm5 = vcmask 519552   ;;  %vm1103_vm6 = vcmask 523264  }
  0x3f   : > { %s1723_s8 = smov 80   ;;  %s1255_s9 = sshll.u32 %s1853_s24, 5 }
  0x40   : > { %370 = vmatpush.bf16.msra.mxu0 %v1299_v19  ;;  %s251_s28 = scalar_lea.vmem [#allocation9], %s1255_s9  ;;  %s1403_s29 = sshll.u32 %s1772_s19, 5 }
  0x41   : > { %s1146_s13 = scalar_lea.hbm %s2156_s4, %s1403_s29  ;;  %s1147_s14 = sshll.u32 %s251_s28, 4  ;;  %s1148_s14 = int_to_ptr.vmem [resolvable:$true] %s1147_s14 }
  0x42   : > { %389 = vmatpush.bf16.msra.mxu1 %v1303_v28 }
  0x44   : > { %371 = vmatpush.bf16.msra.mxu0 %v1291_v25 }
  0x46   : > { %390 = vmatpush.bf16.msra.mxu1 %v1295_v34 }
  0x48   : > { %372 = vmatpush.bf16.msra.mxu0 %v1283_v31 }
  0x4a   : > { %391 = vmatpush.bf16.msra.mxu1 %v1287_v40 }
  0x4c   : > { %373 = vmatpush.bf16.msra.mxu0 %v1275_v37 }
  0x4e   : > { %392 = vmatpush.bf16.msra.mxu1 %v1279_v44 }
  0x50   : > { %374 = vmatpush.bf16.msra.mxu0 %v1267_v43 }
  0x52   : > { %393 = vmatpush.bf16.msra.mxu1 %v1271_v48 }
  0x53   : > { %375 = vmatmul.bf16.vlgmr.msra.gmra.mxu0 %v1378_v45 }
  0x55   : > { %394 = vmatmul.bf16.vlgmr.msra.gmra.mxu1 %v1378_v45 }
  0x63   : > { %380 = vmatmul.bf16.gmra.mxu0 %v1379_v62 }
  0x65   : > { %399 = vmatmul.bf16.gmra.mxu1 %v1379_v62 }
  0xd0   : > { %v376_v49 = vpop.f32.mrf.mxu0 }
  0xd1   : > { %v408_v60 = vmul.f32 0.25, %v376_v49 }
  0xd2   : > { %v395_v50 = vpop.f32.mrf.mxu1 }
  0xd8   : > { %v378_v51 = vpop.f32.mrf.mxu0 }
  0xd9   : > { %v411_v52 = vpack.c.bf16 %v378_v51, %v376_v49  ;;  %v409_v59 = vmul.f32 0.25, %v378_v51 }
  0xda   : > { %v397_v53 = vpop.f32.mrf.mxu1 }
  0xdb   : > { %489 = vrot.lane.b32.xlu2 %v411_v52, %s1717_s21  ;;  %414 = vrot.lane.b32.xlu0 %v411_v52, %s1718_s26  ;;  %v1870_v54 = vpack.c.bf16 %v397_v53, %v395_v50  ;;  %v410_v61 = vpack.c.bf16 %v409_v59, %v408_v60 }
  0xdd   : > { %474 = vmatpush.bf16.msra.mxu3 %v1870_v54 }
  0xe0   : > { %v381_v7 = vpop.f32.mrf.mxu0 }
  0xe1   : > { %v734_v8 = vmul.f32 0.25, %v381_v7 }
  0xe2   : > { %v400_v49 = vpop.f32.mrf.mxu1 }
  0xe8   : > { %v383_v9 = vpop.f32.mrf.mxu0 }
  0xe9   : > { %v735_v10 = vmul.f32 0.25, %v383_v9  ;;  %v737_v22 = vpack.c.bf16 %v383_v9, %v381_v7 }
  0xea   : > { %v402_v50 = vpop.f32.mrf.mxu1 }
  0xeb   : > { %v736_v12 = vpack.c.bf16 %v735_v10, %v734_v8  ;;  %v1916_v51 = vpack.c.bf16 %v402_v50, %v400_v49 }
 0x135   : > { %v490_v55 = vpop.permute.xlu2 %489 }
 0x136   : > { %v495_v56 = vsel %vm416_vm0, %v490_v55, 0 }
 0x137   : > { %504 = vmatpush.bf16.xpose.msrb.mxu3 %v495_v56 }
 0x14d   : > { %v415_v57 = vpop.permute.xlu0 %414 }
 0x14e   : > { %v421_v58 = vsel %vm416_vm0, %v415_v57, 0 }
 0x14f   : > { %430 = vmatpush.bf16.xpose.msra.mxu2 %v421_v58 }
 0x156   : > { %1328 = vmatmul.msk.bf16.vlgmr.msra.gmra.mxu2 %vm416_vm0, %v410_v61 }
 0x1d9   : > { %v432_v1 = vpop.f32.mrf.mxu2 }
 0x1da   : > { %v439_v2 = vsel %vm407_vm1, %v432_v1, -1e+30 }
 0x1db   : > { %v441_v3 = vsel %vm416_vm0, %v439_v2, -inf }
 0x1dc   : > { %442 = vmax.xlane.f32.xlu0 %v441_v3 }
 0x1e1   : > { %v434_v4 = vpop.f32.mrf.mxu2 }
 0x1e2   : > { %v440_v5 = vsel %vm407_vm1, %v434_v4, -1e+30 }
 0x1e3   : > { %v444_v6 = vsel %vm416_vm0, %v440_v5, -inf }
 0x1e4   : > { %445 = vmax.xlane.f32.xlu1 %v444_v6 }
 0x1f0   : > { %809 = vrot.lane.b32.xlu0 %v736_v12, %s1719_s10 }
 0x1f8   : > { %891 = vrot.lane.b32.xlu0 %v736_v12, %s1720_s11 }
 0x24f   : > { %v443_v11 = vpop.xlane.xlu0 %442 }
 0x250   : > { %v447_v13 = vsub.f32 %v439_v2, %v443_v11 }
 0x252   : > { %v449_v14 = vmul.f32 1.442695, %v447_v13 }
 0x254   : > { %1485 = vpow2.f32 %v449_v14 }
 0x257   : > { %v446_v15 = vpop.xlane.xlu1 %445 }
 0x258   : > { %v448_v16 = vsub.f32 %v440_v5, %v446_v15 }
 0x25a   : > { %v1486_v17 = vpop.eup %1485  ;;  %v451_v18 = vmul.f32 1.442695, %v448_v16 }
 0x25b   : > { %v453_v19 = vsel %vm416_vm0, %v1486_v17, 0.0 }
 0x25c   : > { %1487 = vpow2.f32 %v451_v18  ;;  %454 = vadd.xlane.f32.xlu1 %v453_v19 }
 0x262   : > { %v1488_v20 = vpop.eup %1487  ;;  %v810_v43 = vpop.permute.xlu0 %809 }
 0x263   : > { %v456_v21 = vsel %vm416_vm0, %v1488_v20, 0.0 }
 0x264   : > { %457 = vadd.xlane.f32.xlu2 %v456_v21 }
 0x26a   : > { %v892_v47 = vpop.permute.xlu0 %891 }
 0x275   : > { %487 = vrot.lane.b32.xlu1 %v410_v61, %s1719_s10 }
 0x27c   : > { %572 = vrot.lane.b32.xlu2 %v411_v52, %s1721_s6 }
 0x27d   : > { %654 = vrot.lane.b32.xlu1 %v411_v52, %s1722_s7 }
 0x284   : > { %570 = vrot.lane.b32.xlu2 %v410_v61, %s1720_s11 }
 0x285   : > { %811 = vrot.lane.b32.xlu1 %v737_v22, %s1717_s21 }
 0x28c   : > { %652 = vrot.lane.b32.xlu2 %v410_v61, %s1723_s8 }
 0x28d   : > { %974 = vrot.lane.b32.xlu1 %v737_v22, %s1722_s7 }
 0x294   : > { %740 = vrot.lane.b32.xlu2 %v737_v22, %s1718_s26  ;;  %s1134_s26 = scalar_lea.sflag [#allocation5], %s1853_s24 }
 0x295   : > { %893 = vrot.lane.b32.xlu1 %v737_v22, %s1721_s6 }
 0x29c   : > { %972 = vrot.lane.b32.xlu2 %v736_v12, %s1723_s8 }
 0x2a4   : > { %537 = vrot.lane.b32.xlu2 %v1870_v54, %s1719_s10 }
 0x2cf   : > { %v455_v23 = vpop.xlane.xlu1 %454 }
 0x2d0   : > { %1489 = vrcp.f32 %v455_v23 }
 0x2d6   : > { %v1490_v25 = vpop.eup %1489 }
 0x2d7   : > { %v458_v24 = vpop.xlane.xlu2 %457  ;;  %v461_v28 = vmul.f32 %v1490_v25, %v1486_v17 }
 0x2d8   : > { %1491 = vrcp.f32 %v458_v24 }
 0x2de   : > { %v1492_v26 = vpop.eup %1491 }
 0x2df   : > { %v573_v27 = vpop.permute.xlu2 %572  ;;  %v462_v29 = vmul.f32 %v1492_v26, %v1488_v20 }
 0x2e0   : > { %v578_v31 = vsel %vm416_vm0, %v573_v27, 0 }
 0x2e1   : > { %v463_v30 = vpack.c.bf16 %v462_v29, %v461_v28 }
 0x2e3   : > { %1329 = vmatmul.msk.bf16.vlgmr.msra.gmra.mxu3 %vm416_vm0, %v463_v30 }
 0x2e4   : > { %587 = vmatpush.bf16.xpose.msra.mxu3 %v578_v31 }
 0x2e7   : > { %v571_v32 = vpop.permute.xlu2 %570  ;;  %v488_v33 = vpop.permute.xlu1 %487 }
 0x2ef   : > { %v653_v34 = vpop.permute.xlu2 %652  ;;  %v655_v35 = vpop.permute.xlu1 %654 }
 0x2f0   : > { %v660_v36 = vsel %vm416_vm0, %v655_v35, 0 }
 0x2f3   : > { %1330 = vmatmul.msk.bf16.vlgmr.msrb.gmra.mxu3 %vm416_vm0, %v488_v33 }
 0x2f4   : > { %669 = vmatpush.bf16.xpose.msrb.mxu3 %v660_v36 }
 0x2f7   : > { %v741_v37 = vpop.permute.xlu2 %740  ;;  %v812_v38 = vpop.permute.xlu1 %811 }
 0x2f8   : > { %v746_v39 = vsel %vm416_vm0, %v741_v37, 0  ;;  %v817_v42 = vsel %vm416_vm0, %v812_v38, 0 }
 0x2f9   : > { %755 = vmatpush.bf16.xpose.msrb.mxu1 %v746_v39 }
 0x2ff   : > { %v975_v40 = vpop.permute.xlu1 %974  ;;  %v973_v41 = vpop.permute.xlu2 %972 }
 0x300   : > { %1336 = vmatmul.msk.bf16.vlgmr.msrb.gmra.mxu1 %vm416_vm0, %v736_v12  ;;  %v980_v48 = vsel %vm416_vm0, %v975_v40, 0 }
 0x301   : > { %797 = vmatpush.bf16.msra.mxu1 %v1916_v51 }
 0x303   : > { %1332 = vmatmul.msk.bf16.vlgmr.msra.gmra.mxu3 %vm416_vm0, %v571_v32 }
 0x304   : > { %826 = vmatpush.bf16.xpose.msra.mxu3 %v817_v42 }
 0x307   : > { %v894_v44 = vpop.permute.xlu1 %893  ;;  %v538_v45 = vpop.permute.xlu2 %537 }
 0x308   : > { %v899_v46 = vsel %vm416_vm0, %v894_v44, 0  ;;  %550 = vmatpush.bf16.msrb.mxu2 %v538_v45 }
 0x309   : > { %908 = vmatpush.bf16.xpose.msrb.mxu0 %v899_v46 }
 0x310   : > { %1340 = vmatmul.msk.bf16.vlgmr.msrb.gmra.mxu0 %vm416_vm0, %v892_v47 }
 0x313   : > { %1334 = vmatmul.msk.bf16.vlgmr.msrb.gmra.mxu3 %vm416_vm0, %v653_v34 }
 0x314   : > { %989 = vmatpush.bf16.xpose.msrb.mxu3 %v980_v48 }
 0x323   : > { %1338 = vmatmul.msk.bf16.vlgmr.msra.gmra.mxu3 %vm416_vm0, %v810_v43 }
 0x333   : > { %1342 = vmatmul.msk.bf16.vlgmr.msrb.gmra.mxu3 %vm416_vm0, %v973_v41 }
 0x366   : > { %v476_v52 = vpop.f32.mrf.mxu3 }
 0x367   : > { %v481_v53 = vpack.c.bf16 %v476_v52, %v476_v52 }
 0x369   : > { %484 = vst.msk [vmem:[#allocation2] sm:$0xf] %vm483_vm2, %v481_v53 }
 0x36e   : > { %v478_v55 = vpop.f32.mrf.mxu3 }
 0x36f   : > { %v482_v56 = vpack.c.bf16 %v478_v55, %v478_v55 }
 0x371   : > { %485 = vst.msk [vmem:[#allocation2 + $0x4] sm:$0xf] %vm483_vm2, %v482_v56 }
 0x376   : > { %v506_v57 = vpop.f32.mrf.mxu3 }
 0x377   : > { %v511_v58 = vsel %vm407_vm1, %v506_v57, -1e+30 }
 0x378   : > { %v513_v59 = vsel %vm416_vm0, %v511_v58, -inf }
 0x379   : > { %514 = vmax.xlane.f32.xlu2 %v513_v59 }
 0x37d   : > { %v757_v60 = vpop.f32.mrf.mxu1 }
 0x37e   : > { %v1926_v61 = vsel %vm407_vm1, %v757_v60, -1e+30  ;;  %v508_v62 = vpop.f32.mrf.mxu3 }
 0x37f   : > { %v764_v63 = vsel %vm416_vm0, %v1926_v61, -inf  ;;  %v512_v1 = vsel %vm407_vm1, %v508_v62, -1e+30 }
 0x380   : > { %765 = vmax.xlane.f32.xlu1 %v764_v63  ;;  %v516_v5 = vsel %vm416_vm0, %v512_v1, -inf }
 0x385   : > { %v759_v2 = vpop.f32.mrf.mxu1 }
 0x386   : > { %v763_v3 = vsel %vm407_vm1, %v759_v2, -1e+30  ;;  %v589_v4 = vpop.f32.mrf.mxu3 }
 0x387   : > { %v767_v6 = vsel %vm416_vm0, %v763_v3, -inf  ;;  %v594_v17 = vsel %vm407_vm1, %v589_v4, -1e+30 }
 0x388   : > { %517 = vmax.xlane.f32.xlu1 %v516_v5  ;;  %768 = vmax.xlane.f32.xlu0 %v767_v6  ;;  %v596_v19 = vsel %vm416_vm0, %v594_v17, -inf }
 0x38d   : > { %v910_v7 = vpop.f32.mrf.mxu0 }
 0x38e   : > { %v1938_v8 = vsel %vm407_vm1, %v910_v7, -1e+30  ;;  %v591_v9 = vpop.f32.mrf.mxu3 }
 0x38f   : > { %v917_v10 = vsel %vm416_vm0, %v1938_v8, -inf  ;;  %v595_v26 = vsel %vm407_vm1, %v591_v9, -1e+30 }
 0x390   : > { %918 = vmax.xlane.f32.xlu1 %v917_v10  ;;  %v599_v30 = vsel %vm416_vm0, %v595_v26, -inf }
 0x391   : > { %619 = vrot.lane.b32.xlu2 %v1870_v54, %s1720_s11 }
 0x395   : > { %v912_v11 = vpop.f32.mrf.mxu0 }
 0x396   : > { %v1946_v12 = vsel %vm407_vm1, %v912_v11, -1e+30  ;;  %v671_v13 = vpop.f32.mrf.mxu3 }
 0x397   : > { %v1950_v14 = vsel %vm407_vm1, %v671_v13, -1e+30  ;;  %v920_v15 = vsel %vm416_vm0, %v1946_v12, -inf }
 0x398   : > { %921 = vmax.xlane.f32.xlu0 %v920_v15  ;;  %v678_v16 = vsel %vm416_vm0, %v1950_v14, -inf }
 0x399   : > { %679 = vmax.xlane.f32.xlu1 %v678_v16 }
 0x39e   : > { %v673_v18 = vpop.f32.mrf.mxu3 }
 0x39f   : > { %v1961_v20 = vsel %vm407_vm1, %v673_v18, -1e+30 }
 0x3a0   : > { %597 = vmax.xlane.f32.xlu0 %v596_v19  ;;  %v681_v22 = vsel %vm416_vm0, %v1961_v20, -inf }
 0x3a6   : > { %v828_v21 = vpop.f32.mrf.mxu3 }
 0x3a7   : > { %v1982_v31 = vsel %vm407_vm1, %v828_v21, -1e+30 }
 0x3a8   : > { %682 = vmax.xlane.f32.xlu0 %v681_v22  ;;  %v835_v35 = vsel %vm416_vm0, %v1982_v31, -inf }
 0x3ae   : > { %v830_v23 = vpop.f32.mrf.mxu3 }
 0x3af   : > { %v1967_v24 = vsel %vm407_vm1, %v830_v23, -1e+30 }
 0x3b0   : > { %v838_v25 = vsel %vm416_vm0, %v1967_v24, -inf }
 0x3b1   : > { %839 = vmax.xlane.f32.xlu1 %v838_v25 }
 0x3b6   : > { %v991_v27 = vpop.f32.mrf.mxu3 }
 0x3b7   : > { %v1975_v28 = vsel %vm407_vm1, %v991_v27, -1e+30 }
 0x3b8   : > { %v998_v29 = vsel %vm416_vm0, %v1975_v28, -inf }
 0x3b9   : > { %999 = vmax.xlane.f32.xlu1 %v998_v29 }
 0x3ba   : > { %600 = vmax.xlane.f32.xlu2 %v599_v30 }
 0x3be   : > { %v993_v32 = vpop.f32.mrf.mxu3 }
 0x3bf   : > { %v1986_v33 = vsel %vm407_vm1, %v993_v32, -1e+30 }
 0x3c0   : > { %v1001_v34 = vsel %vm416_vm0, %v1986_v33, -inf }
 0x3c1   : > { %1002 = vmax.xlane.f32.xlu0 %v1001_v34 }
 0x3c2   : > { %836 = vmax.xlane.f32.xlu2 %v835_v35 }
 0x3ec   : > { %v515_v36 = vpop.xlane.xlu2 %514 }
 0x3ed   : > { %v519_v37 = vsub.f32 %v511_v58, %v515_v36 }
 0x3ef   : > { %v521_v38 = vmul.f32 1.442695, %v519_v37 }
 0x3f1   : > { %1493 = vpow2.f32 %v521_v38 }
 0x3f3   : > { %v766_v39 = vpop.xlane.xlu1 %765 }
 0x3f4   : > { %v620_v40 = vpop.permute.xlu2 %619 }
 0x3f5   : > { %632 = vmatpush.bf16.msra.mxu2 %v620_v40 }
 0x3f7   : > { %v1992_v41 = vpop.eup %1493 }
 0x3f8   : > { %v525_v0 = vsel %vm416_vm0, %v1992_v41, 0.0 }
 0x3f9   : > { %526 = vadd.xlane.f32.xlu0 %v525_v0 }
 0x3fb   : > { %v518_v42 = vpop.xlane.xlu1 %517  ;;  %v769_v43 = vpop.xlane.xlu0 %768 }
 0x3fc   : > { %v520_v44 = vsub.f32 %v512_v1, %v518_v42  ;;  %v771_v45 = vsub.f32 %v763_v3, %v769_v43 }
 0x3fe   : > { %v523_v46 = vmul.f32 1.442695, %v520_v44  ;;  %v774_v47 = vmul.f32 1.442695, %v771_v45 }
 0x400   : > { %1495 = vpow2.f32 %v523_v46 }
 0x401   : > { %1497 = vpow2.f32 %v774_v47 }
 0x403   : > { %v919_v53 = vpop.xlane.xlu1 %918 }
 0x404   : > { %v923_v15 = vsub.f32 %v1938_v8, %v919_v53 }
 0x406   : > { %v1996_v48 = vpop.eup %1495  ;;  %v925_v21 = vmul.f32 1.442695, %v923_v15 }
 0x407   : > { %v1998_v49 = vpop.eup %1497  ;;  %v528_v50 = vsel %vm416_vm0, %v1996_v48, 0.0 }
 0x408   : > { %529 = vadd.xlane.f32.xlu2 %v528_v50  ;;  %v779_v52 = vsel %vm416_vm0, %v1998_v49, 0.0 }
 0x409   : > { %780 = vadd.xlane.f32.xlu1 %v779_v52 }
 0x40b   : > { %v2004_v55 = vpop.xlane.xlu0 %921 }
 0x40c   : > { %v680_v56 = vpop.xlane.xlu1 %679  ;;  %v924_v0 = vsub.f32 %v1946_v12, %v2004_v55 }
 0x40d   : > { %v684_v59 = vsub.f32 %v1950_v14, %v680_v56  ;;  %v770_v14 = vsub.f32 %v1926_v61, %v766_v39 }
 0x40e   : > { %v927_v43 = vmul.f32 1.442695, %v924_v0 }
 0x40f   : > { %v686_v62 = vmul.f32 1.442695, %v684_v59 }
 0x413   : > { %v598_v57 = vpop.xlane.xlu0 %597 }
 0x414   : > { %v602_v58 = vsub.f32 %v594_v17, %v598_v57 }
 0x416   : > { %v604_v60 = vmul.f32 1.442695, %v602_v58 }
 0x418   : > { %1499 = vpow2.f32 %v604_v60 }
 0x419   : > { %1501 = vpow2.f32 %v686_v62 }
 0x41b   : > { %v683_v4 = vpop.xlane.xlu0 %682 }
 0x41c   : > { %v685_v7 = vsub.f32 %v1961_v20, %v683_v4  ;;  %v772_v20 = vmul.f32 1.442695, %v770_v14 }
 0x41e   : > { %v2007_v63 = vpop.eup %1499  ;;  %v688_v11 = vmul.f32 1.442695, %v685_v7 }
 0x41f   : > { %v608_v1 = vsel %vm416_vm0, %v2007_v63, 0.0  ;;  %v2013_v2 = vpop.eup %1501 }
 0x420   : > { %701 = vrot.lane.b32.xlu2 %v1870_v54, %s1723_s8  ;;  %609 = vadd.xlane.f32.xlu1 %v608_v1  ;;  %v690_v3 = vsel %vm416_vm0, %v2013_v2, 0.0 }
 0x424   : > { %v840_v10 = vpop.xlane.xlu1 %839 }
 0x425   : > { %v842_v17 = vsub.f32 %v1967_v24, %v840_v10 }
 0x427   : > { %v845_v22 = vmul.f32 1.442695, %v842_v17 }
 0x428   : > { %691 = vadd.xlane.f32.xlu1 %v690_v3 }
 0x42c   : > { %v1000_v23 = vpop.xlane.xlu1 %999 }
 0x42d   : > { %v601_v5 = vpop.xlane.xlu2 %600  ;;  %v1004_v25 = vsub.f32 %v1975_v28, %v1000_v23 }
 0x42e   : > { %v603_v6 = vsub.f32 %v595_v26, %v601_v5 }
 0x42f   : > { %v1006_v29 = vmul.f32 1.442695, %v1004_v25 }
 0x430   : > { %v606_v9 = vmul.f32 1.442695, %v603_v6 }
 0x432   : > { %1503 = vpow2.f32 %v606_v9 }
 0x433   : > { %1505 = vpow2.f32 %v688_v11 }
 0x435   : > { %v837_v13 = vpop.xlane.xlu2 %836 }
 0x436   : > { %v841_v54 = vsub.f32 %v1982_v31, %v837_v13  ;;  %v1003_v31 = vpop.xlane.xlu0 %1002 }
 0x437   : > { %v1005_v34 = vsub.f32 %v1986_v33, %v1003_v31 }
 0x438   : > { %v2021_v16 = vpop.eup %1503  ;;  %v843_v18 = vmul.f32 1.442695, %v841_v54 }
 0x439   : > { %v611_v19 = vsel %vm416_vm0, %v2021_v16, 0.0  ;;  %v2026_v61 = vpop.eup %1505  ;;  %v1008_v37 = vmul.f32 1.442695, %v1005_v34 }
 0x43a   : > { %1507 = vpow2.f32 %v843_v18  ;;  %612 = vadd.xlane.f32.xlu0 %v611_v19  ;;  %v693_v26 = vsel %vm416_vm0, %v2026_v61, 0.0 }
 0x43b   : > { %1509 = vpow2.f32 %v772_v20 }
 0x43c   : > { %1511 = vpow2.f32 %v925_v21 }
 0x43d   : > { %1513 = vpow2.f32 %v845_v22 }
 0x43e   : > { %1515 = vpow2.f32 %v1006_v29 }
 0x43f   : > { %1517 = vpow2.f32 %v1008_v37 }
 0x440   : > { %v2028_v8 = vpop.eup %1507 }
 0x441   : > { %v847_v24 = vsel %vm416_vm0, %v2028_v8, 0.0  ;;  %v2035_v27 = vpop.eup %1509 }
 0x442   : > { %848 = vadd.xlane.f32.xlu1 %v847_v24  ;;  %694 = vadd.xlane.f32.xlu0 %v693_v26  ;;  %v2037_v30 = vpop.eup %1511  ;;  %v776_v28 = vsel %vm416_vm0, %v2035_v27, 0.0 }
 0x443   : > { %v2039_v32 = vpop.eup %1513  ;;  %v929_v35 = vsel %vm416_vm0, %v2037_v30, 0.0 }
 0x444   : > { %v850_v36 = vsel %vm416_vm0, %v2039_v32, 0.0  ;;  %v2048_v38 = vpop.eup %1515 }
 0x445   : > { %v1010_v39 = vsel %vm416_vm0, %v2048_v38, 0.0  ;;  %v2052_v33 = vpop.eup %1517 }
 0x446   : > { %v1013_v40 = vsel %vm416_vm0, %v2052_v33, 0.0 }
 0x449   : > { %777 = vadd.xlane.f32.xlu2 %v776_v28 }
 0x44a   : > { %930 = vadd.xlane.f32.xlu1 %v929_v35  ;;  %851 = vadd.xlane.f32.xlu0 %v850_v36 }
 0x452   : > { %1011 = vadd.xlane.f32.xlu1 %v1010_v39 }
 0x45a   : > { %1014 = vadd.xlane.f32.xlu1 %v1013_v40 }
 0x45e   : > { %859 = vrot.lane.b32.xlu0 %v1916_v51, %s1719_s10 }
 0x461   : > { %940 = vrot.lane.b32.xlu2 %v1916_v51, %s1720_s11 }
 0x46c   : > { %v527_v42 = vpop.xlane.xlu0 %526 }
 0x46d   : > { %1519 = vrcp.f32 %v527_v42 }
 0x473   : > { %1021 = vrot.lane.b32.xlu1 %v1916_v51, %s1723_s8  ;;  %v1520_v45 = vpop.eup %1519 }
 0x474   : > { %v533_v47 = vmul.f32 %v1520_v45, %v1992_v41 }
 0x47b   : > { %v530_v44 = vpop.xlane.xlu2 %529 }
 0x47c   : > { %1521 = vrcp.f32 %v530_v44  ;;  %v781_v12 = vpop.xlane.xlu1 %780 }
 0x47d   : > { %1523 = vpow2.f32 %v927_v43 }
 0x482   : > { %v1522_v46 = vpop.eup %1521 }
 0x483   : > { %v534_v50 = vmul.f32 %v1522_v46, %v1996_v48  ;;  %v2066_v52 = vpop.eup %1523  ;;  %v702_v56 = vpop.permute.xlu2 %701 }
 0x484   : > { %v932_v51 = vsel %vm416_vm0, %v2066_v52, 0.0 }
 0x485   : > { %v535_v53 = vpack.c.bf16 %v534_v50, %v533_v47 }
 0x487   : > { %1331 = vmatmul.msk.bf16.vlgmr.msrb.gmra.mxu2 %vm416_vm0, %v535_v53 }
 0x488   : > { %714 = vmatpush.bf16.msrb.mxu2 %v702_v56  ;;  %933 = vadd.xlane.f32.xlu0 %v932_v51 }
 0x493   : > { %v610_v55 = vpop.xlane.xlu1 %609 }
 0x494   : > { %1525 = vrcp.f32 %v610_v55 }
 0x49a   : > { %v1526_v41 = vpop.eup %1525 }
 0x49b   : > { %v692_v58 = vpop.xlane.xlu1 %691  ;;  %v616_v48 = vmul.f32 %v1526_v41, %v2007_v63 }
 0x4ad   : > { %v613_v57 = vpop.xlane.xlu0 %612 }
 0x4ae   : > { %1527 = vrcp.f32 %v613_v57 }
 0x4b4   : > { %v1528_v59 = vpop.eup %1527 }
 0x4b5   : > { %v617_v60 = vmul.f32 %v1528_v59, %v2021_v16  ;;  %v695_v1 = vpop.xlane.xlu0 %694  ;;  %v849_v3 = vpop.xlane.xlu1 %848 }
 0x4b6   : > { %1529 = vrcp.f32 %v695_v1 }
 0x4b7   : > { %v618_v62 = vpack.c.bf16 %v617_v60, %v616_v48  ;;  %1531 = vrcp.f32 %v781_v12 }
 0x4b8   : > { %1533 = vrcp.f32 %v692_v58 }
 0x4b9   : > { %1333 = vmatmul.msk.bf16.vlgmr.msra.gmra.mxu2 %vm416_vm0, %v618_v62 }
 0x4bc   : > { %v778_v4 = vpop.xlane.xlu2 %777  ;;  %v1530_v5 = vpop.eup %1529 }
 0x4bd   : > { %1535 = vrcp.f32 %v778_v4  ;;  %v1532_v6 = vpop.eup %1531  ;;  %v699_v10 = vmul.f32 %v1530_v5, %v2026_v61  ;;  %v931_v11 = vpop.xlane.xlu1 %930  ;;  %v1401_v4 = vld [vmem:[#allocation8 + $0x18] sm:$0xff]  ;;  %v1400_v5 = vld [vmem:[#allocation8 + $0x10] sm:$0xff] }
 0x4be   : > { %v1534_v7 = vpop.eup %1533  ;;  %v785_v63 = vmul.f32 %v1532_v6, %v1998_v49  ;;  %v852_v17 = vpop.xlane.xlu0 %851  ;;  %1114 = vmatpush.bf16.msra.mxu0 %v1401_v4  ;;  %v1399_v6 = vld [vmem:[#allocation8 + $0x8] sm:$0xff] }
 0x4bf   : > { %v698_v54 = vmul.f32 %v1534_v7, %v2013_v2  ;;  %1537 = vrcp.f32 %v852_v17  ;;  %v1398_v7 = vld [vmem:[#allocation8] sm:$0xff] }
 0x4c0   : > { %1539 = vrcp.f32 %v849_v3 }
 0x4c1   : > { %v700_v16 = vpack.c.bf16 %v699_v10, %v698_v54 }
 0x4c2   : > { %1115 = vmatpush.bf16.msra.mxu0 %v1400_v5 }
 0x4c3   : > { %v1536_v9 = vpop.eup %1535 }
 0x4c4   : > { %v784_v13 = vmul.f32 %v1536_v9, %v2035_v27  ;;  %v941_v14 = vpop.permute.xlu2 %940 }
 0x4c5   : > { %953 = vmatpush.bf16.msrb.mxu1 %v941_v14  ;;  %v1012_v18 = vpop.xlane.xlu1 %1011  ;;  %v1538_v19 = vpop.eup %1537 }
 0x4c6   : > { %v786_v15 = vpack.c.bf16 %v785_v63, %v784_v13  ;;  %v1540_v49 = vpop.eup %1539  ;;  %v856_v21 = vmul.f32 %v1538_v19, %v2039_v32  ;;  %1116 = vmatpush.bf16.msra.mxu0 %v1399_v6 }
 0x4c7   : > { %v855_v22 = vmul.f32 %v1540_v49, %v2028_v8 }
 0x4c8   : > { %1337 = vmatmul.msk.bf16.vlgmr.msra.gmra.mxu1 %vm416_vm0, %v786_v15 }
 0x4c9   : > { %1335 = vmatmul.msk.bf16.vlgmr.msrb.gmra.mxu2 %vm416_vm0, %v700_v16  ;;  %v857_v2 = vpack.c.bf16 %v856_v21, %v855_v22 }
 0x4ca   : > { %1117 = vmatpush.bf16.msra.mxu0 %v1398_v7 }
 0x4cd   : > { %v1015_v23 = vpop.xlane.xlu1 %1014 }
 0x4ce   : > { %1541 = vrcp.f32 %v1015_v23 }
 0x4cf   : > { %1543 = vrcp.f32 %v1012_v18 }
 0x4d0   : > { %v860_v20 = vpop.permute.xlu0 %859  ;;  %1545 = vrcp.f32 %v931_v11 }
 0x4d1   : > { %872 = vmatpush.bf16.msra.mxu2 %v860_v20  ;;  %v1484_v20 = vld [vmem:[%s2155_s3] ss:$0 sm:$0xff] }
 0x4d4   : > { %v1542_v61 = vpop.eup %1541 }
 0x4d5   : > { %v1544_v25 = vpop.eup %1543  ;;  %v1019_v24 = vmul.f32 %v1542_v61, %v2052_v33 }
 0x4d6   : > { %v1018_v26 = vmul.f32 %v1544_v25, %v2048_v38  ;;  %v1546_v8 = vpop.eup %1545 }
 0x4d7   : > { %v937_v34 = vmul.f32 %v1546_v8, %v2037_v30 }
 0x4d8   : > { %v1020_v29 = vpack.c.bf16 %v1019_v24, %v1018_v26 }
 0x4d9   : > { %1339 = vmatmul.msk.bf16.vlgmr.msra.gmra.mxu2 %vm416_vm0, %v857_v2 }
 0x4e5   : > { %v1022_v27 = vpop.permute.xlu1 %1021 }
 0x4e6   : > { %1034 = vmatpush.bf16.msrb.mxu2 %v1022_v27 }
 0x4e9   : > { %1343 = vmatmul.msk.bf16.vlgmr.msrb.gmra.mxu2 %vm416_vm0, %v1020_v29 }
 0x4fb   : > { %v934_v31 = vpop.xlane.xlu0 %933 }
 0x4fc   : > { %1547 = vrcp.f32 %v934_v31 }
 0x502   : > { %v1548_v32 = vpop.eup %1547 }
 0x503   : > { %v938_v28 = vmul.f32 %v1548_v32, %v2066_v52 }
 0x505   : > { %v939_v35 = vpack.c.bf16 %v938_v28, %v937_v34 }
 0x507   : > { %1341 = vmatmul.msk.bf16.vlgmr.msrb.gmra.mxu1 %vm416_vm0, %v939_v35 }
 0x50a   : > { %v552_v36 = vpop.f32.mrf.mxu2 }
 0x50b   : > { %v557_v37 = vpack.c.bf16 %v552_v36, %v552_v36 }
 0x50d   : > { %561 = vrot.lane.b32.xlu1 %v557_v37, %s1722_s7 }
 0x512   : > { %v554_v38 = vpop.f32.mrf.mxu2 }
 0x513   : > { %v558_v39 = vpack.c.bf16 %v554_v38, %v554_v38 }
 0x515   : > { %563 = vrot.lane.b32.xlu2 %v558_v39, %s1722_s7 }
 0x53c   : > { %v634_v33 = vpop.f32.mrf.mxu2 }
 0x53d   : > { %v639_v40 = vpack.c.bf16 %v634_v33, %v634_v33 }
 0x53f   : > { %643 = vrot.lane.b32.xlu1 %v639_v40, %s1721_s6 }
 0x544   : > { %v636_v0 = vpop.f32.mrf.mxu2 }
 0x545   : > { %v640_v42 = vpack.c.bf16 %v636_v0, %v636_v0  ;;  %v799_v30 = vpop.f32.mrf.mxu1 }
 0x546   : > { %v804_v43 = vpack.c.bf16 %v799_v30, %v799_v30 }
 0x547   : > { %645 = vrot.lane.b32.xlu0 %v640_v42, %s1721_s6 }
 0x548   : > { %806 = vst.msk [vmem:[#allocation2 + $0x8] sm:$0xf] %vm483_vm2, %v804_v43 }
 0x54c   : > { %v716_v44 = vpop.f32.mrf.mxu2 }
 0x54d   : > { %v721_v45 = vpack.c.bf16 %v716_v44, %v716_v44  ;;  %v801_v46 = vpop.f32.mrf.mxu1 }
 0x54e   : > { %v805_v47 = vpack.c.bf16 %v801_v46, %v801_v46 }
 0x54f   : > { %725 = vrot.lane.b32.xlu2 %v721_v45, %s1717_s21 }
 0x550   : > { %807 = vst.msk [vmem:[#allocation2 + $0xc] sm:$0xf] %vm483_vm2, %v805_v47 }
 0x554   : > { %v718_v50 = vpop.f32.mrf.mxu2 }
 0x555   : > { %v722_v52 = vpack.c.bf16 %v718_v50, %v718_v50 }
 0x557   : > { %727 = vrot.lane.b32.xlu1 %v722_v52, %s1717_s21 }
 0x55c   : > { %v874_v53 = vpop.f32.mrf.mxu2 }
 0x55d   : > { %v879_v56 = vpack.c.bf16 %v874_v53, %v874_v53 }
 0x55f   : > { %883 = vrot.lane.b32.xlu2 %v879_v56, %s1722_s7 }
 0x564   : > { %v876_v51 = vpop.f32.mrf.mxu2 }
 0x565   : > { %v880_v12 = vpack.c.bf16 %v876_v51, %v876_v51 }
 0x567   : > { %885 = vrot.lane.b32.xlu1 %v880_v12, %s1722_s7  ;;  %s1659_s7 = scalar_lea.hbm %s2156_s4, 64 }
 0x56c   : > { %v1036_v55 = vpop.f32.mrf.mxu2 }
 0x56d   : > { %v1041_v57 = vpack.c.bf16 %v1036_v55, %v1036_v55 }
 0x56f   : > { %v564_v58 = vpop.permute.xlu2 %563  ;;  %1045 = vrot.lane.b32.xlu1 %v1041_v57, %s1717_s21 }
 0x570   : > { %569 = vst.msk [vmem:[#allocation2 + $0x4] sm:$0xf] %vm567_vm3, %v564_v58 }
 0x574   : > { %v1038_v60 = vpop.f32.mrf.mxu2 }
 0x575   : > { %v1042_v1 = vpack.c.bf16 %v1038_v60, %v1038_v60 }
 0x57f   : > { %v562_v41 = vpop.permute.xlu1 %561 }
 0x580   : > { %568 = vst.msk [vmem:[#allocation2] sm:$0xf] %vm567_vm3, %v562_v41 }
 0x584   : > { %v955_v59 = vpop.f32.mrf.mxu1 }
 0x585   : > { %v960_v48 = vpack.c.bf16 %v955_v59, %v955_v59 }
 0x587   : > { %964 = vrot.lane.b32.xlu0 %v960_v48, %s1721_s6 }
 0x58c   : > { %v957_v62 = vpop.f32.mrf.mxu1 }
 0x58d   : > { %v961_v3 = vpack.c.bf16 %v957_v62, %v957_v62 }
 0x58f   : > { %1047 = vrot.lane.b32.xlu0 %v1042_v1, %s1717_s21  ;;  %966 = vrot.lane.b32.xlu2 %v961_v3, %s1721_s6  ;;  %s1149_s21 = sshll.u32 %s1146_s13, 4  ;;  %s1150_s21 = int_to_ptr.hbm [resolvable:$true] %s1149_s21 }
 0x590   : > { %s1653_s10 = sshra.s32 %s1150_s21, 4  ;;  %s1654_s10 = int_to_ptr.hbm [resolvable:$true] %s1653_s10 }
 0x591   : > { %s1655_s11 = scalar_lea.hbm %s1654_s10, 32  ;;  %p1660_p11 = scmp.lt.s32.totalorder %s1654_s10, %s2156_s4 }
 0x592   : > { %p1656_p1 = scmp.ne.s32.totalorder %s1654_s10, %s1655_s11  ;;  %p1661_p9 = scmp.lt.s32.totalorder %s1659_s7, %s1655_s11 }
 0x594   : > { %p1657_p4 = pnand %p1656_p1, %p1823_p5  ;;  %p1662_p2 = por %p1661_p9, %p1660_p11 }
 0x596   : > { %p1658_p8 = pneg %p1657_p4 }
 0x598   : > { %p1663_p10 = pnand %p1662_p2, %p1658_p8 }
 0x5a9   : > { %v726_v9 = vpop.permute.xlu2 %725 }
 0x5b1   : > { %v644_v10 = vpop.permute.xlu1 %643 }
 0x5b2   : > { %650 = vst.msk [vmem:[#allocation2] sm:$0xf] %vm649_vm4, %v644_v10 }
 0x5b3   : > { %732 = vst.msk [vmem:[#allocation2] sm:$0xf] %vm731_vm5, %v726_v9 }
 0x5b9   : > { %v884_v11 = vpop.permute.xlu2 %883  ;;  %v646_v63 = vpop.permute.xlu0 %645 }
 0x5ba   : > { %889 = vst.msk [vmem:[#allocation2 + $0x8] sm:$0xf] %vm567_vm3, %v884_v11 }
 0x5bb   : > { %651 = vst.msk [vmem:[#allocation2 + $0x4] sm:$0xf] %vm649_vm4, %v646_v63 }
 0x5c9   : > { %v728_v13 = vpop.permute.xlu1 %727 }
 0x5ca   : > { %733 = vst.msk [vmem:[#allocation2 + $0x4] sm:$0xf] %vm731_vm5, %v728_v13 }
 0x5d1   : > { %v1396_v14 = vld [vmem:[#allocation2] sm:$0xff] }
 0x5d2   : > { %1368 = vmatmul.msk.bf16.vlgmr.msra.gmra.mxu0 %vm1103_vm6, %v1396_v14 }
 0x5d9   : > { %v886_v54 = vpop.permute.xlu1 %885 }
 0x5da   : > { %890 = vst.msk [vmem:[#allocation2 + $0xc] sm:$0xf] %vm567_vm3, %v886_v54 }
 0x5e1   : > { %v1046_v17 = vpop.permute.xlu1 %1045 }
 0x5e9   : > { %v967_v15 = vpop.permute.xlu2 %966 }
 0x5ea   : > { %971 = vst.msk [vmem:[#allocation2 + $0xc] sm:$0xf] %vm649_vm4, %v967_v15 }
 0x5f9   : > { %v965_v16 = vpop.permute.xlu0 %964 }
 0x5fa   : > { %970 = vst.msk [vmem:[#allocation2 + $0x8] sm:$0xf] %vm649_vm4, %v965_v16 }
 0x5fb   : > { %1051 = vst.msk [vmem:[#allocation2 + $0x8] sm:$0xf] %vm731_vm5, %v1046_v17 }
 0x601   : > { %v1048_v18 = vpop.permute.xlu0 %1047 }
 0x602   : > { %1052 = vst.msk [vmem:[#allocation2 + $0xc] sm:$0xf] %vm731_vm5, %v1048_v18 }
 0x609   : > { %v1397_v19 = vld [vmem:[#allocation2 + $0x8] sm:$0xff] }
 0x60a   : > { %1369 = vmatmul.msk.bf16.gmra.mxu0 %vm1103_vm6, %v1397_v19 }
 0x64f   : > { %v1119_v49 = vpop.f32.mrf.mxu0 }
 0x650   : > { %v1120_v21 = vadd.f32 %v1484_v20, %v1119_v49 }
 0x652   : > { %1129 = vst [vmem:[%s251_s28] sm:$0xff] %v1120_v21 }
 0x657   : > { %v1121_v22 = vpop.f32.mrf.mxu0 }
 0x658   : > { %v1122_v2 = vadd.f32 %v1484_v20, %v1121_v22 }
 0x65a   : > { %1130 = vst [vmem:[%s251_s28 + $0x8] sm:$0xff] %v1122_v2 }
 0x687   : > { %v1124_v23 = vpop.f32.mrf.mxu0 }
 0x688   : > { %v1125_v61 = vadd.f32 %v1484_v20, %v1124_v23 }
 0x68a   : > { %1131 = vst [vmem:[%s251_s28 + $0x10] sm:$0xff] %v1125_v61 }
 0x68f   : > { %v1126_v25 = vpop.f32.mrf.mxu0 }
 0x690   : > { %v1127_v24 = vadd.f32 %v1484_v20, %v1126_v25 }
 0x692   : > { %1132 = vst [vmem:[%s251_s28 + $0x18] sm:$0xff] %v1127_v24 }
 0x693   : > { %1666 = shalt.err (!%p1663_p10)
}
 0x694   : > { %s1724_s24 = smov 128   ;;  %s1725_s27 = smov 8  }
 0x695   : > { %1414 = dma.vmem_to_hbm [thread:$0]  (%p1823_p5), %s1148_s14, 512, %s1150_s21, %s1134_s26, %s1724_s24, %s1724_s24, %s1725_s27  }
 0x696 PF: > { %s1164_s25 = sand.u32 1, %s1697_s15   ;;  %p2162_p12 = scmp.ge.s32.totalorder %s1709_s18, 2 }
 0x697   : > { %s1165_s28 = scalar_lea.sflag [#allocation5], %s1164_s25 }
 0x698   : > { %p1428_p13 = pnand %p2162_p12, %p1786_p6 }
 0x69a   : > { %p1429_p0 = pneg %p1428_p13 }
 0x69c   : > { %1692 = dma.done.wait (%p1429_p0), %s1165_s28, 512  }
 0x69d   : > { %1694 = vsyncadd (%p1429_p0), %s1165_s28, 4294966784  ;;  %p18_p3 = scmp.ge.s32.totalorder %s1810_s12, 4   ;;  %s2163_s15 = smov %s1701_s16 }
 0x69e   : > { %s2164_s16 = smov %s1705_s17  ;;  %s2165_s17 = smov %s1819_s20 }
 0x69f   : > { %s2166_s18 = smov %s1810_s12  ;;  %20 = sbr.rel (!%p18_p3) target bundleno = 6 (0x6), region = 89 }
 0x6a4   :  { %1171 = vsyncpa [#allocation4], 1 }
 0x6a5   :  { %1173 = vsyncpa [#allocation4 + $0x1], 1 }
 0x6a6   :  { %1174 = vsyncpa [#allocation7], 1 }
 0x6a7   :  { %1175 = vsyncpa [#allocation5], 1 }
 0x6a8   :  { %1177 = vsyncpa [#allocation5 + $0x1], 1 }

</bundles_post_ra>
